<compile_context>
chip_gen: v5e
topology: v5e:2x2
jax: 0.10.0
libtpu: 0.0.40
codegen_flags: <defaults>
</compile_context>

<pallas_src>
import numpy as np
import jax
import jax.numpy as jnp
from jax.experimental import pallas as pl
from jax.experimental.pallas import tpu as pltpu


INPUT_DIM, ENC_DIM, DEC_DIM = 6, 32, 16
F_PAD = 8                    # input feature dim zero-padded 6 -> 8 (sublane multiple)


# ----------------------------------------------------------------------------
# Pallas kernel (one block of block-diagonally packed graphs per grid step)
# ----------------------------------------------------------------------------
def make_kernel(w_off, v_off, nb, enc):
    out2 = 2 * enc

    def kernel(x_ref, a_ref, p_ref, w_ref, v_ref, o_ref):
        A = a_ref[...]                    # [2*NB, NB] bf16 = [[A+I],[A^T+I]]
        V = v_ref[...]                    # [RV, 64]   f32 bias / BN-shift slab

        def wmat(name):                   # static slice of the weight slab (bf16)
            off, rows = w_off[name]
            return w_ref[off:off + rows, :]

        def vrow(name):                   # static [1, 64] row of the bias slab (f32)
            i = v_off[name]
            return V[i:i + 1, :]

        def gin_layer(hb, l):
            # hb: [NB, Din] bf16.  Both directed aggregations in ONE matmul.
            agg = jnp.dot(A, hb, preferred_element_type=jnp.float32)         # [2NB, Din]
            # first Linear of both directions (column-concatenated weights)
            t = jnp.maximum(
                jnp.dot(agg.astype(jnp.bfloat16), wmat(f"W1_{l}"),
                        preferred_element_type=jnp.float32) + vrow(f"b1_{l}"),
                0.0)                                                          # [2NB, 64]
            # second Linear of both directions (block-diag, 0.5*BN_scale folded)
            u = jnp.maximum(
                jnp.dot(t.astype(jnp.bfloat16), wmat(f"W2_{l}"),
                        preferred_element_type=jnp.float32) + vrow(f"b2_{l}"),
                0.0)                                                          # [2NB, 64]
            # combine directions + BN shift -> next layer's features (f32)
            return (u[0:nb, 0:enc] + u[nb:2 * nb, enc:out2]
                    + vrow(f"shift_{l}")[:, 0:enc])                           # [NB, enc]

        h = gin_layer(x_ref[...], 0)
        h = gin_layer(h.astype(jnp.bfloat16), 1)
        h = gin_layer(h.astype(jnp.bfloat16), 2)

        # global_mean_pool -> linear_before -> ReLU -> (dropout = id, eval)
        # -> linear_mean -> sigmoid
        xe = jnp.dot(p_ref[...], h.astype(jnp.bfloat16),
                     preferred_element_type=jnp.float32)                      # [GB, enc]
        xm = jnp.maximum(
            jnp.dot(xe.astype(jnp.bfloat16), wmat("Wbe"),
                    preferred_element_type=jnp.float32) + vrow("bbe"), 0.0)   # [GB, 64]
        logit = (jnp.dot(xm.astype(jnp.bfloat16), wmat("Wme"),
                         preferred_element_type=jnp.float32) + vrow("bme"))   # [GB, 64]
        o_ref[...] = jax.nn.sigmoid(logit[:, 0:1])                            # [GB, 1]

    return kernel


def directed_gin_predictor(x, a_stack, pool, w_slab, v_slab, *, w_off, v_off, enc):
    """x:[B,NB,Fp] bf16, a_stack:[B,2NB,NB] bf16, pool:[B,GB,NB] bf16,
    w_slab:[RW,2*enc] bf16, v_slab:[RV,2*enc] f32  ->  [B*GB, 1] f32."""
    B, NB, FP = x.shape
    GB = pool.shape[1]
    kernel = make_kernel(w_off, v_off, NB, enc)
    out = pl.pallas_call(
        kernel,
        out_shape=jax.ShapeDtypeStruct((B, GB, 1), jnp.float32),
        grid=(B,),
        in_specs=[
            pl.BlockSpec((None, NB, FP), lambda b: (b, 0, 0)),
            pl.BlockSpec((None, 2 * NB, NB), lambda b: (b, 0, 0)),
            pl.BlockSpec((None, GB, NB), lambda b: (b, 0, 0)),
            pl.BlockSpec(w_slab.shape, lambda b: (0, 0)),   # constant block: resident
            pl.BlockSpec(v_slab.shape, lambda b: (0, 0)),
        ],
        out_specs=pl.BlockSpec((None, GB, 1), lambda b: (b, 0, 0)),
        compiler_params=pltpu.CompilerParams(dimension_semantics=("parallel",)),
    )(x, a_stack, pool, w_slab, v_slab)
    return out.reshape(B * GB, 1)


# ----------------------------------------------------------------------------
# Deterministic parameter construction + host-side fusion (glue, plain JAX)
# ----------------------------------------------------------------------------
def _linear_init(key, fan_in, fan_out):
    k1, k2 = jax.random.split(key)
    bound = 1.0 / np.sqrt(fan_in)
    W = jax.random.uniform(k1, (fan_in, fan_out), jnp.float32, -bound, bound)
    b = jax.random.uniform(k2, (fan_out,), jnp.float32, -bound, bound)
    return W, b


def _gin_layer_raw(key, in_dim, out_dim):
    ks = jax.random.split(key, 8)
    W1f, b1f = _linear_init(ks[0], in_dim, out_dim)
    W2f, b2f = _linear_init(ks[1], out_dim, out_dim)
    W1b, b1b = _linear_init(ks[2], in_dim, out_dim)
    W2b, b2b = _linear_init(ks[3], out_dim, out_dim)
    gamma = jax.random.uniform(ks[4], (out_dim,), jnp.float32, 0.5, 1.5)
    beta = 0.1 * jax.random.normal(ks[5], (out_dim,), jnp.float32)
    rmean = 0.1 * jax.random.normal(ks[6], (out_dim,), jnp.float32)
    rvar = jax.random.uniform(ks[7], (out_dim,), jnp.float32, 0.5, 1.5)
    scale = gamma / jnp.sqrt(rvar + 1e-5)           # strictly positive
    shift = beta - rmean * scale
    return dict(W1f=W1f, b1f=b1f, W2f=W2f, b2f=b2f,
                W1b=W1b, b1b=b1b, W2b=W2b, b2b=b2b, scale=scale, shift=shift)


def build_param_slabs(raw_layers, Wbe, bbe, Wme, bme, *, enc=ENC_DIM, dec=DEC_DIM):
    out2 = 2 * enc
    w_parts, w_off = [], {}
    v_parts, v_off = [], {}

    def add_w(name, mat):
        mat = jnp.asarray(mat, jnp.float32)
        r, c = mat.shape
        mat = jnp.pad(mat, ((0, (-r) % 8), (0, out2 - c)))
        w_off[name] = (int(sum(p.shape[0] for p in w_parts)), int(mat.shape[0]))
        w_parts.append(mat)

    def add_v(name, vec):
        vec = jnp.asarray(vec, jnp.float32).reshape(1, -1)
        vec = jnp.pad(vec, ((0, 0), (0, out2 - vec.shape[1])))
        v_off[name] = len(v_parts)
        v_parts.append(vec)

    for l, p in enumerate(raw_layers):
        s = 0.5 * p["scale"]                        # 0.5 * BN scale, strictly > 0
        assert bool(jnp.all(s > 0)), "BN scale must stay positive to fold through ReLU"
        W1c = jnp.concatenate([p["W1f"], p["W1b"]], axis=1)            # [in, 2*enc]
        b1c = jnp.concatenate([p["b1f"], p["b1b"]])                    # [2*enc]
        W2bd = jnp.zeros((out2, out2), jnp.float32)
        W2bd = W2bd.at[:enc, :enc].set(p["W2f"] * s[None, :])
        W2bd = W2bd.at[enc:, enc:].set(p["W2b"] * s[None, :])
        b2c = jnp.concatenate([p["b2f"] * s, p["b2b"] * s])            # [2*enc]
        add_w(f"W1_{l}", W1c)
        add_w(f"W2_{l}", W2bd)
        add_v(f"b1_{l}", b1c)
        add_v(f"b2_{l}", b2c)
        add_v(f"shift_{l}", p["shift"])

    add_w("Wbe", Wbe)                                                  # [enc, dec] padded
    Wme_pad = jnp.zeros((out2, 1), jnp.float32).at[:dec, 0].set(Wme[:, 0])
    add_w("Wme", Wme_pad)                                              # [2*enc, 1] padded
    add_v("bbe", bbe)
    add_v("bme", bme)

    W_slab = jnp.concatenate(w_parts, axis=0).astype(jnp.bfloat16)
    V_slab = jnp.concatenate(v_parts, axis=0)
    V_slab = jnp.pad(V_slab, ((0, (-V_slab.shape[0]) % 8), (0, 0)))
    return W_slab, V_slab, w_off, v_off


# ----------------------------------------------------------------------------
# Pure-JAX references for correctness checks
# ----------------------------------------------------------------------------
def reference_fused(x, a_stack, pool, w_slab, v_slab, w_off, v_off, nb, enc):
    """Mirror of the kernel math (same fused params / bf16 casts), plain jnp."""
    out2 = 2 * enc
    V = v_slab

    def one(xb, ab, pb):
        def gin(hb, l):
            o1, r1 = w_off[f"W1_{l}"]
            o2, r2 = w_off[f"W2_{l}"]
            agg = jnp.dot(ab, hb, preferred_element_type=jnp.float32)
            t = jnp.maximum(jnp.dot(agg.astype(jnp.bfloat16), w_slab[o1:o1 + r1],
                                    preferred_element_type=jnp.float32)
                            + V[v_off[f"b1_{l}"]], 0.0)
            u = jnp.maximum(jnp.dot(t.astype(jnp.bfloat16), w_slab[o2:o2 + r2],
                                    preferred_element_type=jnp.float32)
                            + V[v_off[f"b2_{l}"]], 0.0)
            return u[:nb, :enc] + u[nb:, enc:out2] + V[v_off[f"shift_{l}"], :enc]

        h = gin(xb, 0)
        h = gin(h.astype(jnp.bfloat16), 1)
        h = gin(h.astype(jnp.bfloat16), 2)
        xe = jnp.dot(pb, h.astype(jnp.bfloat16), preferred_element_type=jnp.float32)
        ob, rb = w_off["Wbe"]
        om, rm = w_off["Wme"]
        xm = jnp.maximum(jnp.dot(xe.astype(jnp.bfloat16), w_slab[ob:ob + rb],
                                 preferred_element_type=jnp.float32)
                         + V[v_off["bbe"]], 0.0)
        logit = jnp.dot(xm.astype(jnp.bfloat16), w_slab[om:om + rm],
                        preferred_element_type=jnp.float32) + V[v_off["bme"]]
        return jax.nn.sigmoid(logit[:, 0:1])

    return jnp.stack([one(x[b], a_stack[b], pool[b]) for b in range(x.shape[0])])


def reference_f32(x, A_big, P_big, raw_layers, Wbe, bbe, Wme, bme):
    """Original module semantics (eval mode), full f32, unfused parameters."""
    def gin(h, p):
        agg_f = h + A_big @ h
        agg_b = h + A_big.T @ h

        def mlp(z, W1, b1, W2, b2):
            return jnp.maximum(z @ W1 + b1, 0.0) @ W2 + b2

        o1 = jnp.maximum(mlp(agg_f, p["W1f"], p["b1f"], p["W2f"], p["b2f"]), 0.0)
        o2 = jnp.maximum(mlp(agg_b, p["W1b"], p["b1b"], p["W2b"], p["b2b"]), 0.0)
        return 0.5 * (o1 + o2) * p["scale"] + p["shift"]

    def one(xb):
        h = xb
        for p in raw_layers:
            h = gin(h, p)
        xe = P_big @ h
        xm = jnp.maximum(xe @ Wbe + bbe, 0.0)
        return jax.nn.sigmoid(xm @ Wme + bme)

    return jnp.stack([one(x[b]) for b in range(x.shape[0])])


# ----------------------------------------------------------------------------
if __name__ == "__main__":
    # --- base deterministic graph batch: 2 DAGs, 7 + 9 = 16 nodes ------------
    N0, G0 = 16, 2
    batch0 = np.array([0] * 7 + [1] * 9, dtype=np.int32)
    src, dst = [], []
    for i in range(6):
        src.append(i); dst.append(i + 1)
    src += [0, 2]; dst += [3, 6]
    for i in range(7, 15):
        src.append(i); dst.append(i + 1)
    src += [7, 9]; dst += [10, 15]
    edge_index = np.stack([np.asarray(src), np.asarray(dst)]).astype(np.int32)

    A0 = np.zeros((N0, N0), np.float32)               # A[dst, src]
    np.add.at(A0, (edge_index[1], edge_index[0]), 1.0)
    counts = np.bincount(batch0, minlength=G0)
    P0 = np.zeros((G0, N0), np.float32)               # mean-pool rows
    P0[batch0, np.arange(N0)] = 1.0 / counts[batch0]

    # --- batch the workload: block-diagonal packing + grid over blocks -------
    COPIES = 8                         # graph-copies per block (block-diagonal A)
    B = 4                              # grid size (blocks per pallas_call)
    NB, GB = N0 * COPIES, G0 * COPIES  # 128 nodes / 16 graphs per block

    A_big = np.zeros((NB, NB), np.float32)
    P_big = np.zeros((GB, NB), np.float32)
    for c in range(COPIES):
        A_big[c * N0:(c + 1) * N0, c * N0:(c + 1) * N0] = A0
        P_big[c * G0:(c + 1) * G0, c * N0:(c + 1) * N0] = P0
    eye = np.eye(NB, dtype=np.float32)
    A_stack_np = np.concatenate([A_big + eye, A_big.T + eye], axis=0)   # [2NB, NB]

    a_stack = jnp.asarray(np.tile(A_stack_np[None], (B, 1, 1)), jnp.bfloat16)
    pool = jnp.asarray(np.tile(P_big[None], (B, 1, 1)), jnp.bfloat16)

    # --- node features --------------------------------------------------------
    key = jax.random.PRNGKey(0)
    kx, k1, k2, k3, k4, k5 = jax.random.split(key, 6)
    x_f32 = jax.random.normal(kx, (B, NB, INPUT_DIM), jnp.float32)
    x_bf16 = jnp.pad(x_f32, ((0, 0), (0, 0), (0, F_PAD - INPUT_DIM))).astype(jnp.bfloat16)

    # --- deterministic parameters (eval-mode BN folded host-side) ------------
    raw_layers = [
        _gin_layer_raw(k1, INPUT_DIM, ENC_DIM),   # directed_gin_1
        _gin_layer_raw(k2, ENC_DIM, ENC_DIM),     # directed_gin_2
        _gin_layer_raw(k3, ENC_DIM, ENC_DIM),     # directed_gin_3
    ]
    Wbe, bbe = _linear_init(k4, ENC_DIM, DEC_DIM)  # linear_before
    Wme, bme = _linear_init(k5, DEC_DIM, 1)        # linear_mean
    w_slab, v_slab, w_off, v_off = build_param_slabs(raw_layers, Wbe, bbe, Wme, bme)

    # --- run the Pallas kernel ------------------------------------------------
    predict = jax.jit(lambda xa, aa, pa, wa, va: directed_gin_predictor(
        xa, aa, pa, wa, va, w_off=w_off, v_off=v_off, enc=ENC_DIM))
    out = jax.block_until_ready(predict(x_bf16, a_stack, pool, w_slab, v_slab))
    assert out.shape == (B * GB, 1)

    # --- verify vs exact-math mirror (same fused params / bf16 casts) --------
    ref_fused = reference_fused(x_bf16, a_stack, pool, w_slab, v_slab,
                                w_off, v_off, NB, ENC_DIM).reshape(B * GB, 1)
    np.testing.assert_allclose(np.asarray(out), np.asarray(ref_fused),
                               rtol=2e-3, atol=2e-3)

    # --- verify vs original f32 module semantics (loose tol for bf16 matmuls)
    ref_f32 = reference_f32(x_f32, jnp.asarray(A_big), jnp.asarray(P_big),
                            raw_layers, Wbe, bbe, Wme, bme).reshape(B * GB, 1)
    np.testing.assert_allclose(np.asarray(out), np.asarray(ref_f32),
                               rtol=0.0, atol=5e-2)

    print("KERNEL_OK")
</pallas_src>

<mosaic_0001>
module attributes {stable_mosaic.version = 11 : i64} {
  func.func @kernel(%arg0: i32, %arg1: memref<1x128x8xbf16, #tpu.memory_space<vmem>>, %arg2: memref<1x256x128xbf16, #tpu.memory_space<vmem>>, %arg3: memref<1x16x128xbf16, #tpu.memory_space<vmem>>, %arg4: memref<360x64xbf16, #tpu.memory_space<vmem>>, %arg5: memref<16x64xf32, #tpu.memory_space<vmem>>, %arg6: memref<1x16x1xf32, #tpu.memory_space<vmem>>) attributes {dimension_semantics = [#tpu.dimension_semantics<parallel>], iteration_bounds = array<i64: 4>, scalar_prefetch = 0 : i64, scratch_operands = 0 : i64, tpu.core_type = #tpu.core_type<tc>, window_params = [{transform_indices = @transform_0, window_bounds = array<i64: 1, 128, 8>}, {transform_indices = @transform_1, window_bounds = array<i64: 1, 256, 128>}, {transform_indices = @transform_2, window_bounds = array<i64: 1, 16, 128>}, {pipeline_mode = #tpu.pipeline_mode<synchronous>, transform_indices = @transform_3, window_bounds = array<i64: 360, 64>}, {pipeline_mode = #tpu.pipeline_mode<synchronous>, transform_indices = @transform_4, window_bounds = array<i64: 16, 64>}, {transform_indices = @transform_5, window_bounds = array<i64: 1, 16, 1>}]} {
    %c0 = arith.constant 0 : index
    %c0_0 = arith.constant 0 : index
    %c0_1 = arith.constant 0 : index
    %0 = vector.load %arg2[%c0, %c0_0, %c0_1] : memref<1x256x128xbf16, #tpu.memory_space<vmem>>, vector<1x256x128xbf16>
    %1 = vector.shape_cast %0 : vector<1x256x128xbf16> to vector<256x128xbf16>
    %c0_2 = arith.constant 0 : index
    %c0_3 = arith.constant 0 : index
    %2 = vector.load %arg5[%c0_2, %c0_3] : memref<16x64xf32, #tpu.memory_space<vmem>>, vector<16x64xf32>
    %c0_4 = arith.constant 0 : index
    %c0_5 = arith.constant 0 : index
    %c0_6 = arith.constant 0 : index
    %3 = vector.load %arg1[%c0_4, %c0_5, %c0_6] : memref<1x128x8xbf16, #tpu.memory_space<vmem>>, vector<1x128x8xbf16>
    %4 = vector.shape_cast %3 : vector<1x128x8xbf16> to vector<128x8xbf16>
    %cst = arith.constant dense<0.000000e+00> : vector<256x8xf32>
    %5 = tpu.matmul %1, %4, %cst {dimension_numbers = #tpu.dot_dimension_numbers<[1], [0], [0], [1], [0, 0, 1, 1], [], []>} : vector<256x128xbf16>, vector<128x8xbf16>, vector<256x8xf32> -> vector<256x8xf32>
    %6 = arith.truncf %5 : vector<256x8xf32> to vector<256x8xbf16>
    %c0_7 = arith.constant 0 : index
    %c0_8 = arith.constant 0 : index
    %7 = vector.load %arg4[%c0_7, %c0_8] : memref<360x64xbf16, #tpu.memory_space<vmem>>, vector<8x64xbf16>
    %cst_9 = arith.constant dense<0.000000e+00> : vector<256x64xf32>
    %8 = tpu.matmul %6, %7, %cst_9 {dimension_numbers = #tpu.dot_dimension_numbers<[1], [0], [0], [1], [0, 0, 1, 1], [], []>} : vector<256x8xbf16>, vector<8x64xbf16>, vector<256x64xf32> -> vector<256x64xf32>
    %9 = vector.extract_strided_slice %2 {offsets = [0, 0], sizes = [1, 64], strides = [1, 1]} : vector<16x64xf32> to vector<1x64xf32>
    %10 = vector.broadcast %9 : vector<1x64xf32> to vector<256x64xf32>
    %11 = arith.addf %8, %10 : vector<256x64xf32>
    %cst_10 = arith.constant 0.000000e+00 : f32
    %12 = vector.broadcast %cst_10 : f32 to vector<256x64xf32>
    %13 = arith.maximumf %11, %12 : vector<256x64xf32>
    %14 = arith.truncf %13 : vector<256x64xf32> to vector<256x64xbf16>
    %c8 = arith.constant 8 : index
    %c0_11 = arith.constant 0 : index
    %15 = vector.load %arg4[%c8, %c0_11] : memref<360x64xbf16, #tpu.memory_space<vmem>>, vector<64x64xbf16>
    %cst_12 = arith.constant dense<0.000000e+00> : vector<256x64xf32>
    %16 = tpu.matmul %14, %15, %cst_12 {dimension_numbers = #tpu.dot_dimension_numbers<[1], [0], [0], [1], [0, 0, 1, 1], [], []>} : vector<256x64xbf16>, vector<64x64xbf16>, vector<256x64xf32> -> vector<256x64xf32>
    %17 = vector.extract_strided_slice %2 {offsets = [1, 0], sizes = [1, 64], strides = [1, 1]} : vector<16x64xf32> to vector<1x64xf32>
    %18 = vector.broadcast %17 : vector<1x64xf32> to vector<256x64xf32>
    %19 = arith.addf %16, %18 : vector<256x64xf32>
    %cst_13 = arith.constant 0.000000e+00 : f32
    %20 = vector.broadcast %cst_13 : f32 to vector<256x64xf32>
    %21 = arith.maximumf %19, %20 : vector<256x64xf32>
    %22 = vector.extract_strided_slice %21 {offsets = [0, 0], sizes = [128, 32], strides = [1, 1]} : vector<256x64xf32> to vector<128x32xf32>
    %23 = vector.extract_strided_slice %21 {offsets = [128, 32], sizes = [128, 32], strides = [1, 1]} : vector<256x64xf32> to vector<128x32xf32>
    %24 = arith.addf %22, %23 : vector<128x32xf32>
    %25 = vector.extract_strided_slice %2 {offsets = [2, 0], sizes = [1, 64], strides = [1, 1]} : vector<16x64xf32> to vector<1x64xf32>
    %26 = vector.extract_strided_slice %25 {offsets = [0, 0], sizes = [1, 32], strides = [1, 1]} : vector<1x64xf32> to vector<1x32xf32>
    %27 = vector.broadcast %26 : vector<1x32xf32> to vector<128x32xf32>
    %28 = arith.addf %24, %27 : vector<128x32xf32>
    %29 = arith.truncf %28 : vector<128x32xf32> to vector<128x32xbf16>
    %cst_14 = arith.constant dense<0.000000e+00> : vector<256x32xf32>
    %30 = tpu.matmul %1, %29, %cst_14 {dimension_numbers = #tpu.dot_dimension_numbers<[1], [0], [0], [1], [0, 0, 1, 1], [], []>} : vector<256x128xbf16>, vector<128x32xbf16>, vector<256x32xf32> -> vector<256x32xf32>
    %31 = arith.truncf %30 : vector<256x32xf32> to vector<256x32xbf16>
    %c72 = arith.constant 72 : index
    %c0_15 = arith.constant 0 : index
    %32 = vector.load %arg4[%c72, %c0_15] : memref<360x64xbf16, #tpu.memory_space<vmem>>, vector<32x64xbf16>
    %cst_16 = arith.constant dense<0.000000e+00> : vector<256x64xf32>
    %33 = tpu.matmul %31, %32, %cst_16 {dimension_numbers = #tpu.dot_dimension_numbers<[1], [0], [0], [1], [0, 0, 1, 1], [], []>} : vector<256x32xbf16>, vector<32x64xbf16>, vector<256x64xf32> -> vector<256x64xf32>
    %34 = vector.extract_strided_slice %2 {offsets = [3, 0], sizes = [1, 64], strides = [1, 1]} : vector<16x64xf32> to vector<1x64xf32>
    %35 = vector.broadcast %34 : vector<1x64xf32> to vector<256x64xf32>
    %36 = arith.addf %33, %35 : vector<256x64xf32>
    %cst_17 = arith.constant 0.000000e+00 : f32
    %37 = vector.broadcast %cst_17 : f32 to vector<256x64xf32>
    %38 = arith.maximumf %36, %37 : vector<256x64xf32>
    %39 = arith.truncf %38 : vector<256x64xf32> to vector<256x64xbf16>
    %c104 = arith.constant 104 : index
    %c0_18 = arith.constant 0 : index
    %40 = vector.load %arg4[%c104, %c0_18] : memref<360x64xbf16, #tpu.memory_space<vmem>>, vector<64x64xbf16>
    %cst_19 = arith.constant dense<0.000000e+00> : vector<256x64xf32>
    %41 = tpu.matmul %39, %40, %cst_19 {dimension_numbers = #tpu.dot_dimension_numbers<[1], [0], [0], [1], [0, 0, 1, 1], [], []>} : vector<256x64xbf16>, vector<64x64xbf16>, vector<256x64xf32> -> vector<256x64xf32>
    %42 = vector.extract_strided_slice %2 {offsets = [4, 0], sizes = [1, 64], strides = [1, 1]} : vector<16x64xf32> to vector<1x64xf32>
    %43 = vector.broadcast %42 : vector<1x64xf32> to vector<256x64xf32>
    %44 = arith.addf %41, %43 : vector<256x64xf32>
    %cst_20 = arith.constant 0.000000e+00 : f32
    %45 = vector.broadcast %cst_20 : f32 to vector<256x64xf32>
    %46 = arith.maximumf %44, %45 : vector<256x64xf32>
    %47 = vector.extract_strided_slice %46 {offsets = [0, 0], sizes = [128, 32], strides = [1, 1]} : vector<256x64xf32> to vector<128x32xf32>
    %48 = vector.extract_strided_slice %46 {offsets = [128, 32], sizes = [128, 32], strides = [1, 1]} : vector<256x64xf32> to vector<128x32xf32>
    %49 = arith.addf %47, %48 : vector<128x32xf32>
    %50 = vector.extract_strided_slice %2 {offsets = [5, 0], sizes = [1, 64], strides = [1, 1]} : vector<16x64xf32> to vector<1x64xf32>
    %51 = vector.extract_strided_slice %50 {offsets = [0, 0], sizes = [1, 32], strides = [1, 1]} : vector<1x64xf32> to vector<1x32xf32>
    %52 = vector.broadcast %51 : vector<1x32xf32> to vector<128x32xf32>
    %53 = arith.addf %49, %52 : vector<128x32xf32>
    %54 = arith.truncf %53 : vector<128x32xf32> to vector<128x32xbf16>
    %cst_21 = arith.constant dense<0.000000e+00> : vector<256x32xf32>
    %55 = tpu.matmul %1, %54, %cst_21 {dimension_numbers = #tpu.dot_dimension_numbers<[1], [0], [0], [1], [0, 0, 1, 1], [], []>} : vector<256x128xbf16>, vector<128x32xbf16>, vector<256x32xf32> -> vector<256x32xf32>
    %56 = arith.truncf %55 : vector<256x32xf32> to vector<256x32xbf16>
    %c168 = arith.constant 168 : index
    %c0_22 = arith.constant 0 : index
    %57 = vector.load %arg4[%c168, %c0_22] : memref<360x64xbf16, #tpu.memory_space<vmem>>, vector<32x64xbf16>
    %cst_23 = arith.constant dense<0.000000e+00> : vector<256x64xf32>
    %58 = tpu.matmul %56, %57, %cst_23 {dimension_numbers = #tpu.dot_dimension_numbers<[1], [0], [0], [1], [0, 0, 1, 1], [], []>} : vector<256x32xbf16>, vector<32x64xbf16>, vector<256x64xf32> -> vector<256x64xf32>
    %59 = vector.extract_strided_slice %2 {offsets = [6, 0], sizes = [1, 64], strides = [1, 1]} : vector<16x64xf32> to vector<1x64xf32>
    %60 = vector.broadcast %59 : vector<1x64xf32> to vector<256x64xf32>
    %61 = arith.addf %58, %60 : vector<256x64xf32>
    %cst_24 = arith.constant 0.000000e+00 : f32
    %62 = vector.broadcast %cst_24 : f32 to vector<256x64xf32>
    %63 = arith.maximumf %61, %62 : vector<256x64xf32>
    %64 = arith.truncf %63 : vector<256x64xf32> to vector<256x64xbf16>
    %c200 = arith.constant 200 : index
    %c0_25 = arith.constant 0 : index
    %65 = vector.load %arg4[%c200, %c0_25] : memref<360x64xbf16, #tpu.memory_space<vmem>>, vector<64x64xbf16>
    %cst_26 = arith.constant dense<0.000000e+00> : vector<256x64xf32>
    %66 = tpu.matmul %64, %65, %cst_26 {dimension_numbers = #tpu.dot_dimension_numbers<[1], [0], [0], [1], [0, 0, 1, 1], [], []>} : vector<256x64xbf16>, vector<64x64xbf16>, vector<256x64xf32> -> vector<256x64xf32>
    %67 = vector.extract_strided_slice %2 {offsets = [7, 0], sizes = [1, 64], strides = [1, 1]} : vector<16x64xf32> to vector<1x64xf32>
    %68 = vector.broadcast %67 : vector<1x64xf32> to vector<256x64xf32>
    %69 = arith.addf %66, %68 : vector<256x64xf32>
    %cst_27 = arith.constant 0.000000e+00 : f32
    %70 = vector.broadcast %cst_27 : f32 to vector<256x64xf32>
    %71 = arith.maximumf %69, %70 : vector<256x64xf32>
    %72 = vector.extract_strided_slice %71 {offsets = [0, 0], sizes = [128, 32], strides = [1, 1]} : vector<256x64xf32> to vector<128x32xf32>
    %73 = vector.extract_strided_slice %71 {offsets = [128, 32], sizes = [128, 32], strides = [1, 1]} : vector<256x64xf32> to vector<128x32xf32>
    %74 = arith.addf %72, %73 : vector<128x32xf32>
    %75 = vector.extract_strided_slice %2 {offsets = [8, 0], sizes = [1, 64], strides = [1, 1]} : vector<16x64xf32> to vector<1x64xf32>
    %76 = vector.extract_strided_slice %75 {offsets = [0, 0], sizes = [1, 32], strides = [1, 1]} : vector<1x64xf32> to vector<1x32xf32>
    %77 = vector.broadcast %76 : vector<1x32xf32> to vector<128x32xf32>
    %78 = arith.addf %74, %77 : vector<128x32xf32>
    %c0_28 = arith.constant 0 : index
    %c0_29 = arith.constant 0 : index
    %c0_30 = arith.constant 0 : index
    %79 = vector.load %arg3[%c0_28, %c0_29, %c0_30] : memref<1x16x128xbf16, #tpu.memory_space<vmem>>, vector<1x16x128xbf16>
    %80 = vector.shape_cast %79 : vector<1x16x128xbf16> to vector<16x128xbf16>
    %81 = arith.truncf %78 : vector<128x32xf32> to vector<128x32xbf16>
    %cst_31 = arith.constant dense<0.000000e+00> : vector<16x32xf32>
    %82 = tpu.matmul %80, %81, %cst_31 {dimension_numbers = #tpu.dot_dimension_numbers<[1], [0], [0], [1], [0, 0, 1, 1], [], []>} : vector<16x128xbf16>, vector<128x32xbf16>, vector<16x32xf32> -> vector<16x32xf32>
    %83 = arith.truncf %82 : vector<16x32xf32> to vector<16x32xbf16>
    %c264 = arith.constant 264 : index
    %c0_32 = arith.constant 0 : index
    %84 = vector.load %arg4[%c264, %c0_32] : memref<360x64xbf16, #tpu.memory_space<vmem>>, vector<32x64xbf16>
    %cst_33 = arith.constant dense<0.000000e+00> : vector<16x64xf32>
    %85 = tpu.matmul %83, %84, %cst_33 {dimension_numbers = #tpu.dot_dimension_numbers<[1], [0], [0], [1], [0, 0, 1, 1], [], []>} : vector<16x32xbf16>, vector<32x64xbf16>, vector<16x64xf32> -> vector<16x64xf32>
    %86 = vector.extract_strided_slice %2 {offsets = [9, 0], sizes = [1, 64], strides = [1, 1]} : vector<16x64xf32> to vector<1x64xf32>
    %87 = vector.broadcast %86 : vector<1x64xf32> to vector<16x64xf32>
    %88 = arith.addf %85, %87 : vector<16x64xf32>
    %cst_34 = arith.constant 0.000000e+00 : f32
    %89 = vector.broadcast %cst_34 : f32 to vector<16x64xf32>
    %90 = arith.maximumf %88, %89 : vector<16x64xf32>
    %91 = arith.truncf %90 : vector<16x64xf32> to vector<16x64xbf16>
    %c296 = arith.constant 296 : index
    %c0_35 = arith.constant 0 : index
    %92 = vector.load %arg4[%c296, %c0_35] : memref<360x64xbf16, #tpu.memory_space<vmem>>, vector<64x64xbf16>
    %cst_36 = arith.constant dense<0.000000e+00> : vector<16x64xf32>
    %93 = tpu.matmul %91, %92, %cst_36 {dimension_numbers = #tpu.dot_dimension_numbers<[1], [0], [0], [1], [0, 0, 1, 1], [], []>} : vector<16x64xbf16>, vector<64x64xbf16>, vector<16x64xf32> -> vector<16x64xf32>
    %94 = vector.extract_strided_slice %2 {offsets = [10, 0], sizes = [1, 64], strides = [1, 1]} : vector<16x64xf32> to vector<1x64xf32>
    %95 = vector.broadcast %94 : vector<1x64xf32> to vector<16x64xf32>
    %96 = arith.addf %93, %95 : vector<16x64xf32>
    %97 = vector.extract_strided_slice %96 {offsets = [0, 0], sizes = [16, 1], strides = [1, 1]} : vector<16x64xf32> to vector<16x1xf32>
    %98 = arith.negf %97 : vector<16x1xf32>
    %99 = math.exp %98 : vector<16x1xf32>
    %cst_37 = arith.constant 1.000000e+00 : f32
    %100 = vector.broadcast %cst_37 : f32 to vector<16x1xf32>
    %101 = arith.addf %100, %99 : vector<16x1xf32>
    %102 = arith.divf %100, %101 : vector<16x1xf32>
    %c0_38 = arith.constant 0 : index
    %c0_39 = arith.constant 0 : index
    %c0_40 = arith.constant 0 : index
    %103 = vector.load %arg6[%c0_38, %c0_39, %c0_40] : memref<1x16x1xf32, #tpu.memory_space<vmem>>, vector<1x16x1xf32>
    %104 = vector.shape_cast %103 : vector<1x16x1xf32> to vector<16x1xf32>
    %105 = vector.shape_cast %102 : vector<16x1xf32> to vector<1x16x1xf32>
    tpu.vector_store %arg6[%c0_38, %c0_39, %c0_40], %105 {strides = array<i32>} : memref<1x16x1xf32, #tpu.memory_space<vmem>>, vector<1x16x1xf32>,
    return
  }
  func.func @transform_0(%arg0: i32) -> (i32, i32, i32) {
    %c0_i32 = arith.constant 0 : i32
    %c0_i32_0 = arith.constant 0 : i32
    %c0_i32_1 = arith.constant 0 : i32
    return %arg0, %c0_i32, %c0_i32_0 : i32, i32, i32
  }
  func.func @transform_1(%arg0: i32) -> (i32, i32, i32) {
    %c0_i32 = arith.constant 0 : i32
    %c0_i32_0 = arith.constant 0 : i32
    %c0_i32_1 = arith.constant 0 : i32
    return %arg0, %c0_i32, %c0_i32_0 : i32, i32, i32
  }
  func.func @transform_2(%arg0: i32) -> (i32, i32, i32) {
    %c0_i32 = arith.constant 0 : i32
    %c0_i32_0 = arith.constant 0 : i32
    %c0_i32_1 = arith.constant 0 : i32
    return %arg0, %c0_i32, %c0_i32_0 : i32, i32, i32
  }
  func.func @transform_3(%arg0: i32) -> (i32, i32) {
    %c0_i32 = arith.constant 0 : i32
    %c0_i32_0 = arith.constant 0 : i32
    %c0_i32_1 = arith.constant 0 : i32
    return %c0_i32, %c0_i32_0 : i32, i32
  }
  func.func @transform_4(%arg0: i32) -> (i32, i32) {
    %c0_i32 = arith.constant 0 : i32
    %c0_i32_0 = arith.constant 0 : i32
    %c0_i32_1 = arith.constant 0 : i32
    return %c0_i32, %c0_i32_0 : i32, i32
  }
  func.func @transform_5(%arg0: i32) -> (i32, i32, i32) {
    %c0_i32 = arith.constant 0 : i32
    %c0_i32_0 = arith.constant 0 : i32
    %c0_i32_1 = arith.constant 0 : i32
    return %arg0, %c0_i32, %c0_i32_0 : i32, i32, i32
  }
}

</mosaic_0001>

<bundles_post_ra>
// kernel: _lambda_.1
= control target key start
LH: loop header
LB: loop body
LE: loop exit
PB: predicated region body
PF: predicated region fallthrough
CT: control target
= control target key end

     0   :  { %10 = vsyncpa [#allocation3], 0  ;;  %s3942_s0 = inlined_call_operand.vmem [shape: bf16[4,128,8], index: 0, kind: input, shape index: {}]   ;;  %s3943_s1 = inlined_call_operand.vmem [shape: bf16[4,256,128], index: 1, kind: input, shape index: {}]   ;;  %s3944_s2 = inlined_call_operand.hbm [shape: bf16[4,16,128], index: 2, kind: input, shape index: {}]   ;;  %s3945_s3 = inlined_call_operand.vmem [shape: bf16[360,64], index: 3, kind: input, shape index: {}]   ;;  %s3946_s4 = inlined_call_operand.vmem [shape: f32[16,64], index: 4, kind: input, shape index: {}]   ;;  %s3947_s5 = inlined_call_operand.vmem [shape: f32[4,16,1], index: 5, kind: output, shape index: {}]  }
   0x1   :  { %12 = vsyncpa [#allocation3 + $0x1], 0  ;;  %s3082_s18 = smov 0   ;;  %s3084_s19 = smov 0  }
   0x2   :  { %s3086_s20 = smov 0   ;;  %s3088_s21 = smov 0  }
   0x3 LB: > { %s3101_s22 = sadd.s32 4294967295, %s3047_s21   ;;  %s3104_s23 = sadd.s32 1, %s3047_s21   ;;  %s3047_s21 = sphi %s3088_s21, %s3954_s21   ;;  %s3043_s20 = sphi %s3086_s20, %s3953_s20   ;;  %s3039_s19 = sphi %s3084_s19, %s3952_s19   ;;  %s3035_s18 = sphi %s3082_s18, %s3951_s18  }
   0x4   : > { %s74_s24 = ssub.s32 %s3047_s21, %s3104_s23  ;;  %s77_s25 = sadd.s32 1, %s3043_s20 }
   0x5   : > { %p75_p0 = scmp.eq.s32.totalorder %s74_s24, 0  ;;  %p84_p1 = scmp.ne.s32.totalorder %s3043_s20, %s3039_s19 }
   0x6   : > { %p85_p2 = scmp.eq.s32.totalorder %s3047_s21, 0  ;;  %p90_p3 = scmp.ne.s32.totalorder %s3039_s19, %s3035_s18 }
   0x7   : > { %s3114_s26 = scalar_select %p75_p0, %s3043_s20, %s77_s25  }
   0x8   : > { %p3116_p4 = por %p85_p2, %p84_p1  ;;  %p91_p5 = scmp.eq.s32.totalorder %s3101_s22, 0 }
   0x9   : > { %p2922_p6 = scmp.lt.s32.totalorder %s3047_s21, 4  ;;  %s204_s29 = sand.u32 1, %s3043_s20  }
   0xa   : > { %p3122_p7 = por %p91_p5, %p90_p3  ;;  %s2561_s30 = sshll.u32 %s204_s29, 3 }
   0xb   : > { %s2862_s6 = sshll.u32 %s3047_s21, 3  ;;  %s208_s10 = scalar_lea.vmem [#allocation2], %s2561_s30 }
   0xc   : > { %s213_s9 = scalar_lea.hbm %s3944_s2, %s2862_s6  ;;  %s216_s11 = sshll.u32 %s208_s10, 4  ;;  %s217_s11 = int_to_ptr.vmem [resolvable:$true] %s216_s11 }
   0xd   : > { %s214_s12 = sshll.u32 %s213_s9, 4  ;;  %p3133_p8 = pnand %p2922_p6, %p3116_p4  ;;  %s215_s12 = int_to_ptr.hbm [resolvable:$true] %s214_s12 }
   0xe   : > { %p2564_p9 = scmp.ge.s32.totalorder %s3047_s21, 1  ;;  %s205_s14 = scalar_lea.sflag [#allocation3], %s204_s29 }
   0xf   : > { %s2983_s15 = sshra.s32 %s215_s12, 4  ;;  %p2987_p11 = pneg %p3133_p8  ;;  %s2984_s15 = int_to_ptr.hbm [resolvable:$true] %s2983_s15 }
  0x10   : > { %s2985_s16 = scalar_lea.hbm %s2984_s15, 8  ;;  %s2990_s24 = scalar_lea.hbm %s3944_s2, 32 }
  0x11   : > { %p2986_p10 = scmp.ne.s32.totalorder %s2984_s15, %s2985_s16  ;;  %p2991_p0 = scmp.lt.s32.totalorder %s2984_s15, %s3944_s2 }
  0x12   : > { %p2992_p1 = scmp.lt.s32.totalorder %s2990_s24, %s2985_s16 }
  0x13   : > { %p2988_p12 = pnand %p2987_p11, %p2986_p10 }
  0x14   : > { %p2993_p2 = por %p2992_p1, %p2991_p0 }
  0x15   : > { %p2989_p13 = pneg %p2988_p12 }
  0x17   : > { %p2994_p3 = pnand %p2993_p2, %p2989_p13 }
  0x19   : > { %2997 = shalt.err (!%p2994_p3)
}
  0x1a   : > { %s3049_s29 = smov 64   ;;  %s3050_s30 = smov 4  }
  0x1b   : > { %2921 = dma.hbm_to_vmem [thread:$0]  (!%p3133_p8), %s215_s12, 128, %s217_s11, %s205_s14, %s3049_s29, %s3049_s29, %s3050_s30  }
  0x1c   : > { %p224_p4 = scmp.lt.s32.totalorder %s3047_s21, 5 }
  0x1e   : > { %p225_p5 = pnand %p2564_p9, %p224_p4 }
  0x1f   : > { %s230_s6 = sand.u32 (!%p225_p5), 1, %s3039_s19  }
  0x20   : > { %228 = sbr.rel (%p225_p5) target bundleno = 3092 (0xc14), region = 40  ;;  %s3152_s7 = sshll.u32 (!%p225_p5), %s230_s6, 3 }
  0x21   : > { %s231_s8 = scalar_lea.sflag (!%p225_p5), [#allocation3], %s230_s6  ;;  %s234_s9 = scalar_lea.vmem (!%p225_p5), [#allocation2], %s3152_s7 }
  0x25   : > { %3030 = dma.done.wait (%p3122_p7), %s231_s8, 128  }
  0x26   : > { %3032 = vsyncadd (%p3122_p7), %s231_s8, 4294967168  ;;  %p272_p6 = scmp.lt.s32.totalorder %s3101_s22, 3  ;;  %v587_v18 = vld [vmem:[%s3945_s3] sm:$0xf]  ;;  %vm638_vm0 = vcmask 1043456   ;;  %vm589_vm1 = vcmask 64512  }
  0x27   : > { %v640_v19 = vsel %vm638_vm0, %v587_v18, 0  ;;  %vm812_vm2 = vcmask 523264   ;;  %s3051_s11 = smov 96   ;;  %vm1209_vm3 = vcmask 261120   ;;  %vm2464_vm7 = vcmask 7168  }
  0x28   : > { %s3956_s22 = smov (!%p272_p6, %s3101_s22), 3  ;;  %2913 = vmatpush.bf16.msra.mxu1 %v640_v19  ;;  %2914 = vmatpush.bf16.msra.mxu2 %v640_v19 }
  0x29   : > { %s2863_s21 = sshll.u32 %s3956_s22, 6  ;;  %s2864_s28 = sshll.u32 %s3956_s22, 7  ;;  %2915 = vmatpush.bf16.msra.mxu3 %v640_v19 }
  0x2a   : > { %s276_s12 = scalar_lea.vmem %s3942_s0, %s2863_s21  ;;  %s3171_s15 = scalar_lea.vmem %s3943_s1, %s2864_s28 }
  0x2b   : > { %v2889_v0 = vld [vmem:[%s276_s12 + $0x38] sm:$0xff]  ;;  %v2888_v1 = vld [vmem:[%s276_s12 + $0x30] sm:$0xff]  ;;  %v2887_v2 = vld [vmem:[%s276_s12 + $0x28] sm:$0xff]  ;;  %s2865_s16 = sshll.u32 %s3956_s22, 4 }
  0x2c   : > { %482 = vmatpush.bf16.msra.mxu0 %v2889_v0  ;;  %v2886_v3 = vld [vmem:[%s276_s12 + $0x20] sm:$0xff]  ;;  %v2885_v4 = vld [vmem:[%s276_s12 + $0x18] sm:$0xff]  ;;  %v2884_v5 = vld [vmem:[%s276_s12 + $0x10] sm:$0xff]  ;;  %s286_s24 = scalar_lea.vmem %s3947_s5, %s2865_s16 }
  0x2d   : > { %v2883_v6 = vld [vmem:[%s276_s12 + $0x8] sm:$0xff]  ;;  %v2882_v7 = vld [vmem:[%s276_s12] sm:$0xff]  ;;  %v3182_v10 = vld [vmem:[%s3171_s15 + $0x10] sm:$0xff] }
  0x2e   : > { %v3174_v8 = vld [vmem:[%s3171_s15] sm:$0xff]  ;;  %v3178_v9 = vld [vmem:[%s3171_s15 + $0x8] sm:$0xff]  ;;  %v3186_v11 = vld [vmem:[%s3171_s15 + $0x18] sm:$0xff] }
  0x2f   : > { %v3190_v12 = vld [vmem:[%s3171_s15 + $0x20] sm:$0xff]  ;;  %v3194_v13 = vld [vmem:[%s3171_s15 + $0x28] sm:$0xff]  ;;  %v3198_v14 = vld [vmem:[%s3171_s15 + $0x30] sm:$0xff] }
  0x30   : > { %483 = vmatpush.bf16.msra.mxu0 %v2888_v1  ;;  %v3202_v15 = vld [vmem:[%s3171_s15 + $0x38] sm:$0xff]  ;;  %v3206_v16 = vld [vmem:[%s3171_s15 + $0x40] sm:$0xff]  ;;  %v3213_v22 = vld [vmem:[%s3171_s15 + $0x48] sm:$0xff] }
  0x31   : > { %v3217_v26 = vld [vmem:[%s3171_s15 + $0x50] sm:$0xff]  ;;  %v3222_v30 = vld [vmem:[%s3171_s15 + $0x58] sm:$0xff]  ;;  %v3227_v34 = vld [vmem:[%s3171_s15 + $0x60] sm:$0xff] }
  0x32   : > { %v3232_v38 = vld [vmem:[%s3171_s15 + $0x68] sm:$0xff]  ;;  %v3237_v42 = vld [vmem:[%s3171_s15 + $0x70] sm:$0xff]  ;;  %v3242_v46 = vld [vmem:[%s3171_s15 + $0x78] sm:$0xff] }
  0x34   : > { %484 = vmatpush.bf16.msra.mxu0 %v2887_v2 }
  0x38   : > { %485 = vmatpush.bf16.msra.mxu0 %v2886_v3 }
  0x3c   : > { %486 = vmatpush.bf16.msra.mxu0 %v2885_v4  ;;  %v2893_v4 = vld [vmem:[%s3945_s3 + $0x1c] sm:$0xff] }
  0x3d   : > { %865 = vmatpush.bf16.msrb.mxu2 %v2893_v4 }
  0x40   : > { %487 = vmatpush.bf16.msra.mxu0 %v2884_v5 }
  0x44   : > { %488 = vmatpush.bf16.msra.mxu0 %v2883_v6  ;;  %v2892_v6 = vld [vmem:[%s3945_s3 + $0x14] sm:$0xff] }
  0x45   : > { %866 = vmatpush.bf16.msrb.mxu2 %v2892_v6 }
  0x48   : > { %489 = vmatpush.bf16.msra.mxu0 %v2882_v7  ;;  %v2891_v7 = vld [vmem:[%s3945_s3 + $0xc] sm:$0xff] }
  0x49   : > { %867 = vmatpush.bf16.msrb.mxu2 %v2891_v7 }
  0x4b   : > { %490 = vmatmul.bf16.vlgmr.msra.gmra.mxu0 %v3174_v8 }
  0x4c   : > { %649 = vmatpush.bf16.msrb.mxu0 %v640_v19  ;;  %v2890_v19 = vld [vmem:[%s3945_s3 + $0x4] sm:$0xff] }
  0x4d   : > { %868 = vmatpush.bf16.msrb.mxu2 %v2890_v19 }
  0x5b   : > { %495 = vmatmul.bf16.gmra.mxu0 %v3178_v9 }
  0x6b   : > { %500 = vmatmul.bf16.gmra.mxu0 %v3182_v10 }
  0x7b   : > { %505 = vmatmul.bf16.gmra.mxu0 %v3186_v11 }
  0x8b   : > { %510 = vmatmul.bf16.gmra.mxu0 %v3190_v12 }
  0x9b   : > { %515 = vmatmul.bf16.gmra.mxu0 %v3194_v13 }
  0xab   : > { %520 = vmatmul.bf16.gmra.mxu0 %v3198_v14 }
  0xbb   : > { %525 = vmatmul.bf16.gmra.mxu0 %v3202_v15 }
  0xc8   : > { %v491_v17 = vpop.f32.mrf.mxu0 }
  0xcb   : > { %530 = vmatmul.bf16.gmra.mxu0 %v3206_v16 }
  0xd0   : > { %v493_v20 = vpop.f32.mrf.mxu0 }
  0xd1   : > { %v571_v21 = vpack.c.bf16 %v493_v20, %v491_v17 }
  0xd8   : > { %v496_v23 = vpop.f32.mrf.mxu0 }
  0xdb   : > { %535 = vmatmul.bf16.gmra.mxu0 %v3213_v22 }
  0xe0   : > { %v498_v24 = vpop.f32.mrf.mxu0 }
  0xe1   : > { %v572_v25 = vpack.c.bf16 %v498_v24, %v496_v23 }
  0xe8   : > { %v501_v27 = vpop.f32.mrf.mxu0 }
  0xeb   : > { %540 = vmatmul.bf16.gmra.mxu0 %v3217_v26 }
  0xf0   : > { %v503_v28 = vpop.f32.mrf.mxu0 }
  0xf1   : > { %v573_v29 = vpack.c.bf16 %v503_v28, %v501_v27 }
  0xf3   : > { %2670 = vmatmul.msk.bf16.vlgmr.msra.gmra.mxu1 %vm589_vm1, %v573_v29 }
  0xf8   : > { %v506_v31 = vpop.f32.mrf.mxu0 }
  0xfb   : > { %545 = vmatmul.bf16.gmra.mxu0 %v3222_v30 }
 0x100   : > { %v508_v32 = vpop.f32.mrf.mxu0 }
 0x101   : > { %v574_v33 = vpack.c.bf16 %v508_v32, %v506_v31 }
 0x103   : > { %2671 = vmatmul.msk.bf16.gmra.mxu1 %vm589_vm1, %v574_v33 }
 0x108   : > { %v511_v35 = vpop.f32.mrf.mxu0 }
 0x10b   : > { %550 = vmatmul.bf16.gmra.mxu0 %v3227_v34 }
 0x110   : > { %v513_v36 = vpop.f32.mrf.mxu0 }
 0x111   : > { %v575_v37 = vpack.c.bf16 %v513_v36, %v511_v35 }
 0x113   : > { %2672 = vmatmul.msk.bf16.gmra.mxu1 %vm589_vm1, %v575_v37 }
 0x118   : > { %v516_v39 = vpop.f32.mrf.mxu0 }
 0x11b   : > { %555 = vmatmul.bf16.gmra.mxu0 %v3232_v38 }
 0x120   : > { %v518_v40 = vpop.f32.mrf.mxu0 }
 0x121   : > { %v576_v41 = vpack.c.bf16 %v518_v40, %v516_v39 }
 0x123   : > { %2673 = vmatmul.msk.bf16.gmra.mxu1 %vm589_vm1, %v576_v41 }
 0x128   : > { %v521_v43 = vpop.f32.mrf.mxu0 }
 0x12b   : > { %560 = vmatmul.bf16.gmra.mxu0 %v3237_v42 }
 0x130   : > { %v523_v44 = vpop.f32.mrf.mxu0 }
 0x131   : > { %v577_v45 = vpack.c.bf16 %v523_v44, %v521_v43 }
 0x133   : > { %2674 = vmatmul.msk.bf16.gmra.mxu1 %vm589_vm1, %v577_v45 }
 0x138   : > { %v526_v47 = vpop.f32.mrf.mxu0 }
 0x13b   : > { %565 = vmatmul.bf16.gmra.mxu0 %v3242_v46 }
 0x140   : > { %v528_v48 = vpop.f32.mrf.mxu0 }
 0x141   : > { %v578_v49 = vpack.c.bf16 %v528_v48, %v526_v47 }
 0x143   : > { %2675 = vmatmul.msk.bf16.gmra.mxu1 %vm589_vm1, %v578_v49 }
 0x148   : > { %v531_v50 = vpop.f32.mrf.mxu0 }
 0x14b   : > { %2668 = vmatmul.msk.bf16.vlgmr.msrb.gmra.mxu0 %vm589_vm1, %v571_v21 }
 0x150   : > { %v533_v51 = vpop.f32.mrf.mxu0 }
 0x151   : > { %v579_v52 = vpack.c.bf16 %v533_v51, %v531_v50 }
 0x153   : > { %2676 = vmatmul.msk.bf16.vlgmr.msra.gmra.mxu2 %vm589_vm1, %v579_v52 }
 0x158   : > { %v536_v53 = vpop.f32.mrf.mxu0 }
 0x15b   : > { %2669 = vmatmul.msk.bf16.gmra.mxu0 %vm589_vm1, %v572_v25  ;;  %v3271_v25 = vld [vmem:[%s3946_s4] sm:$0xff] }
 0x15c   : > { %v3274_v28 = vperm.slane %v3271_v25, 0 }
 0x160   : > { %v538_v54 = vpop.f32.mrf.mxu0 }
 0x161   : > { %v580_v55 = vpack.c.bf16 %v538_v54, %v536_v53 }
 0x163   : > { %2677 = vmatmul.msk.bf16.gmra.mxu2 %vm589_vm1, %v580_v55 }
 0x168   : > { %v541_v56 = vpop.f32.mrf.mxu0 }
 0x170   : > { %v543_v57 = vpop.f32.mrf.mxu0  ;;  %v661_v27 = vpop.f32.mrf.mxu1 }
 0x171   : > { %v581_v58 = vpack.c.bf16 %v543_v57, %v541_v56  ;;  %v662_v51 = vadd.f32 %v661_v27, %v3274_v28 }
 0x173   : > { %2678 = vmatmul.msk.bf16.vlgmr.msra.gmra.mxu3 %vm589_vm1, %v581_v58  ;;  %v735_v53 = vmax.f32 %v662_v51, 0.0 }
 0x178   : > { %v546_v59 = vpop.f32.mrf.mxu0  ;;  %v663_v37 = vpop.f32.mrf.mxu1 }
 0x179   : > { %v664_v50 = vadd.f32 %v663_v37, %v3274_v28 }
 0x17b   : > { %v736_v52 = vmax.f32 %v664_v50, 0.0 }
 0x17d   : > { %v765_v55 = vpack.c.bf16 %v736_v52, %v735_v53 }
 0x180   : > { %v548_v60 = vpop.f32.mrf.mxu0  ;;  %v666_v41 = vpop.f32.mrf.mxu1 }
 0x181   : > { %v582_v61 = vpack.c.bf16 %v548_v60, %v546_v59  ;;  %v667_v58 = vadd.f32 %v666_v41, %v3274_v28 }
 0x183   : > { %2679 = vmatmul.msk.bf16.gmra.mxu3 %vm589_vm1, %v582_v61  ;;  %v737_v60 = vmax.f32 %v667_v58, 0.0 }
 0x188   : > { %v551_v62 = vpop.f32.mrf.mxu0  ;;  %v668_v49 = vpop.f32.mrf.mxu1 }
 0x189   : > { %v669_v56 = vadd.f32 %v668_v49, %v3274_v28 }
 0x18b   : > { %v738_v59 = vmax.f32 %v669_v56, 0.0 }
 0x18d   : > { %v766_v61 = vpack.c.bf16 %v738_v59, %v737_v60 }
 0x190   : > { %v553_v63 = vpop.f32.mrf.mxu0  ;;  %v671_v54 = vpop.f32.mrf.mxu1 }
 0x191   : > { %v583_v0 = vpack.c.bf16 %v553_v63, %v551_v62 }
 0x193   : > { %2680 = vmatmul.msk.bf16.gmra.mxu3 %vm589_vm1, %v583_v0  ;;  %v672_v0 = vadd.f32 %v671_v54, %v3274_v28 }
 0x198   : > { %v556_v1 = vpop.f32.mrf.mxu0  ;;  %v673_v57 = vpop.f32.mrf.mxu1 }
 0x199   : > { %v674_v63 = vadd.f32 %v673_v57, %v3274_v28 }
 0x1a0   : > { %v558_v2 = vpop.f32.mrf.mxu0  ;;  %v676_v62 = vpop.f32.mrf.mxu1 }
 0x1a1   : > { %v584_v3 = vpack.c.bf16 %v558_v2, %v556_v1  ;;  %v740_v1 = vmax.f32 %v674_v63, 0.0  ;;  %v677_v7 = vadd.f32 %v676_v62, %v3274_v28 }
 0x1a3   : > { %2681 = vmatmul.msk.bf16.gmra.mxu3 %vm589_vm1, %v584_v3  ;;  %v739_v3 = vmax.f32 %v672_v0, 0.0 }
 0x1a5   : > { %v767_v4 = vpack.c.bf16 %v740_v1, %v739_v3 }
 0x1a8   : > { %v561_v5 = vpop.f32.mrf.mxu0  ;;  %v678_v2 = vpop.f32.mrf.mxu1 }
 0x1a9   : > { %v679_v6 = vadd.f32 %v678_v2, %v3274_v28 }
 0x1b0   : > { %v563_v17 = vpop.f32.mrf.mxu0 }
 0x1b1   : > { %v585_v18 = vpack.c.bf16 %v563_v17, %v561_v5  ;;  %v681_v5 = vpop.f32.mrf.mxu1  ;;  %v742_v17 = vmax.f32 %v679_v6, 0.0 }
 0x1b3   : > { %2682 = vmatmul.msk.bf16.gmra.mxu3 %vm589_vm1, %v585_v18  ;;  %v741_v18 = vmax.f32 %v677_v7, 0.0 }
 0x1b5   : > { %v768_v19 = vpack.c.bf16 %v742_v17, %v741_v18 }
 0x1b8   : > { %v566_v20 = vpop.f32.mrf.mxu0 }
 0x1c0   : > { %v568_v21 = vpop.f32.mrf.mxu0 }
 0x1c1   : > { %v586_v23 = vpack.c.bf16 %v568_v21, %v566_v20  ;;  %v683_v20 = vpop.f32.mrf.mxu1 }
 0x1c2   : > { %v684_v21 = vadd.f32 %v683_v20, %v3274_v28 }
 0x1c3   : > { %2683 = vmatmul.msk.bf16.gmra.mxu3 %vm589_vm1, %v586_v23  ;;  %v682_v23 = vadd.f32 %v681_v5, %v3274_v28 }
 0x1c4   : > { %v744_v27 = vmax.f32 %v684_v21, 0.0 }
 0x1c8   : > { %v651_v24 = vpop.f32.mrf.mxu0 }
 0x1c9   : > { %v652_v29 = vadd.f32 %v651_v24, %v3274_v28  ;;  %v686_v24 = vpop.f32.mrf.mxu1 }
 0x1ca   : > { %v687_v37 = vadd.f32 %v686_v24, %v3274_v28 }
 0x1cb   : > { %v731_v33 = vmax.f32 %v652_v29, 0.0  ;;  %v743_v29 = vmax.f32 %v682_v23, 0.0 }
 0x1d0   : > { %v653_v31 = vpop.f32.mrf.mxu0 }
 0x1d1   : > { %v654_v32 = vadd.f32 %v653_v31, %v3274_v28 }
 0x1d3   : > { %v732_v35 = vmax.f32 %v654_v32, 0.0  ;;  %v769_v32 = vpack.c.bf16 %v744_v27, %v743_v29 }
 0x1d5   : > { %v763_v36 = vpack.c.bf16 %v732_v35, %v731_v33  ;;  %v688_v33 = vpop.f32.mrf.mxu1 }
 0x1d6   : > { %v691_v31 = vpop.f32.mrf.mxu2  ;;  %v689_v35 = vadd.f32 %v688_v33, %v3274_v28 }
 0x1d7   : > { %2700 = vmatmul.msk.bf16.vlgmr.msrb.gmra.mxu2 %vm812_vm2, %v763_v36 }
 0x1d8   : > { %v656_v39 = vpop.f32.mrf.mxu0 }
 0x1d9   : > { %v657_v40 = vadd.f32 %v656_v39, %v3274_v28  ;;  %v746_v39 = vmax.f32 %v689_v35, 0.0 }
 0x1db   : > { %v733_v45 = vmax.f32 %v657_v40, 0.0  ;;  %v745_v40 = vmax.f32 %v687_v37, 0.0 }
 0x1dd   : > { %v770_v41 = vpack.c.bf16 %v746_v39, %v745_v40 }
 0x1de   : > { %v693_v36 = vpop.f32.mrf.mxu2 }
 0x1e0   : > { %v658_v43 = vpop.f32.mrf.mxu0 }
 0x1e1   : > { %v659_v44 = vadd.f32 %v658_v43, %v3274_v28 }
 0x1e3   : > { %v734_v47 = vmax.f32 %v659_v44, 0.0 }
 0x1e5   : > { %v764_v48 = vpack.c.bf16 %v734_v47, %v733_v45  ;;  %v694_v45 = vadd.f32 %v693_v36, %v3274_v28  ;;  %v692_v47 = vadd.f32 %v691_v31, %v3274_v28 }
 0x1e6   : > { %v696_v43 = vpop.f32.mrf.mxu2 }
 0x1e7   : > { %2701 = vmatmul.msk.bf16.gmra.mxu2 %vm812_vm2, %v764_v48  ;;  %v748_v48 = vmax.f32 %v694_v45, 0.0  ;;  %v747_v50 = vmax.f32 %v692_v47, 0.0 }
 0x1e9   : > { %v771_v51 = vpack.c.bf16 %v748_v48, %v747_v50 }
 0x1ee   : > { %v698_v49 = vpop.f32.mrf.mxu2 }
 0x1ef   : > { %v699_v54 = vadd.f32 %v698_v49, %v3274_v28 }
 0x1f1   : > { %v750_v57 = vmax.f32 %v699_v54, 0.0 }
 0x1f6   : > { %v701_v44 = vpop.f32.mrf.mxu3 }
 0x1f7   : > { %2702 = vmatmul.msk.bf16.gmra.mxu2 %vm812_vm2, %v765_v55  ;;  %v697_v55 = vadd.f32 %v696_v43, %v3274_v28  ;;  %v702_v0 = vadd.f32 %v701_v44, %v3274_v28 }
 0x1f9   : > { %v749_v59 = vmax.f32 %v697_v55, 0.0  ;;  %v751_v3 = vmax.f32 %v702_v0, 0.0 }
 0x1fb   : > { %v772_v60 = vpack.c.bf16 %v750_v57, %v749_v59 }
 0x1fe   : > { %v703_v52 = vpop.f32.mrf.mxu3 }
 0x1ff   : > { %v704_v63 = vadd.f32 %v703_v52, %v3274_v28 }
 0x201   : > { %v752_v1 = vmax.f32 %v704_v63, 0.0 }
 0x203   : > { %v773_v5 = vpack.c.bf16 %v752_v1, %v751_v3 }
 0x206   : > { %v706_v56 = vpop.f32.mrf.mxu3 }
 0x207   : > { %2703 = vmatmul.msk.bf16.gmra.mxu2 %vm812_vm2, %v766_v61  ;;  %v707_v18 = vadd.f32 %v706_v56, %v3274_v28 }
 0x209   : > { %v753_v21 = vmax.f32 %v707_v18, 0.0 }
 0x20e   : > { %v708_v61 = vpop.f32.mrf.mxu3 }
 0x20f   : > { %v709_v7 = vadd.f32 %v708_v61, %v3274_v28 }
 0x217   : > { %2704 = vmatmul.msk.bf16.gmra.mxu2 %vm812_vm2, %v767_v4  ;;  %v711_v4 = vpop.f32.mrf.mxu3 }
 0x218   : > { %v712_v31 = vadd.f32 %v711_v4, %v3274_v28 }
 0x21a   : > { %v755_v36 = vmax.f32 %v712_v31, 0.0 }
 0x21f   : > { %v713_v17 = vpop.f32.mrf.mxu3 }
 0x220   : > { %v714_v29 = vadd.f32 %v713_v17, %v3274_v28 }
 0x227   : > { %2705 = vmatmul.msk.bf16.gmra.mxu2 %vm812_vm2, %v768_v19  ;;  %v754_v19 = vmax.f32 %v709_v7, 0.0  ;;  %v716_v24 = vpop.f32.mrf.mxu3 }
 0x228   : > { %v717_v43 = vadd.f32 %v716_v24, %v3274_v28 }
 0x229   : > { %v774_v23 = vpack.c.bf16 %v754_v19, %v753_v21 }
 0x22a   : > { %v757_v47 = vmax.f32 %v717_v43, 0.0 }
 0x22f   : > { %v718_v33 = vpop.f32.mrf.mxu3 }
 0x237   : > { %2706 = vmatmul.msk.bf16.gmra.mxu2 %vm812_vm2, %v769_v32  ;;  %v756_v32 = vmax.f32 %v714_v29, 0.0  ;;  %v721_v40 = vpop.f32.mrf.mxu3 }
 0x238   : > { %v722_v52 = vadd.f32 %v721_v40, %v3274_v28 }
 0x239   : > { %v775_v37 = vpack.c.bf16 %v756_v32, %v755_v36  ;;  %v3357_v36 = vperm.slane %v3271_v25, 1 }
 0x23a   : > { %v759_v57 = vmax.f32 %v722_v52, 0.0 }
 0x23f   : > { %v723_v49 = vpop.f32.mrf.mxu3 }
 0x247   : > { %2707 = vmatmul.msk.bf16.gmra.mxu2 %vm812_vm2, %v770_v41  ;;  %v719_v41 = vadd.f32 %v718_v33, %v3274_v28  ;;  %v726_v54 = vpop.f32.mrf.mxu3 }
 0x248   : > { %v727_v0 = vadd.f32 %v726_v54, %v3274_v28 }
 0x249   : > { %v758_v44 = vmax.f32 %v719_v41, 0.0 }
 0x24a   : > { %v761_v4 = vmax.f32 %v727_v0, 0.0 }
 0x24b   : > { %v776_v48 = vpack.c.bf16 %v758_v44, %v757_v47 }
 0x257   : > { %2708 = vmatmul.msk.bf16.gmra.mxu2 %vm812_vm2, %v771_v51  ;;  %v724_v51 = vadd.f32 %v723_v49, %v3274_v28 }
 0x259   : > { %v760_v55 = vmax.f32 %v724_v51, 0.0 }
 0x25a   : > { %v3303_v53 = vpop.f32.mrf.mxu2 }
 0x25b   : > { %v777_v59 = vpack.c.bf16 %v760_v55, %v759_v57 }
 0x262   : > { %v3307_v58 = vpop.f32.mrf.mxu2 }
 0x267   : > { %2709 = vmatmul.msk.bf16.gmra.mxu2 %vm812_vm2, %v772_v60  ;;  %v728_v60 = vpop.f32.mrf.mxu3 }
 0x268   : > { %v729_v63 = vadd.f32 %v728_v60, %v3274_v28 }
 0x26a   : > { %v3310_v62 = vpop.f32.mrf.mxu2  ;;  %v762_v1 = vmax.f32 %v729_v63, 0.0 }
 0x272   : > { %v3314_v2 = vpop.f32.mrf.mxu2 }
 0x277   : > { %2710 = vmatmul.msk.bf16.gmra.mxu2 %vm812_vm2, %v773_v5  ;;  %v778_v5 = vpack.c.bf16 %v762_v1, %v761_v4 }
 0x27a   : > { %v3317_v6 = vpop.f32.mrf.mxu2 }
 0x282   : > { %v3321_v20 = vpop.f32.mrf.mxu2 }
 0x287   : > { %2711 = vmatmul.msk.bf16.gmra.mxu2 %vm812_vm2, %v774_v23 }
 0x28a   : > { %v3324_v27 = vpop.f32.mrf.mxu2 }
 0x292   : > { %v3328_v35 = vpop.f32.mrf.mxu2 }
 0x297   : > { %2712 = vmatmul.msk.bf16.gmra.mxu2 %vm812_vm2, %v775_v37 }
 0x29a   : > { %v3331_v39 = vpop.f32.mrf.mxu2 }
 0x2a2   : > { %v3335_v45 = vpop.f32.mrf.mxu2 }
 0x2a7   : > { %2713 = vmatmul.msk.bf16.gmra.mxu2 %vm812_vm2, %v776_v48 }
 0x2aa   : > { %v3338_v50 = vpop.f32.mrf.mxu2 }
 0x2b2   : > { %v3342_v56 = vpop.f32.mrf.mxu2 }
 0x2b7   : > { %2714 = vmatmul.msk.bf16.gmra.mxu2 %vm812_vm2, %v777_v59 }
 0x2ba   : > { %v3345_v61 = vpop.f32.mrf.mxu2 }
 0x2c2   : > { %v3349_v3 = vpop.f32.mrf.mxu2 }
 0x2c7   : > { %2715 = vmatmul.msk.bf16.gmra.mxu2 %vm812_vm2, %v778_v5 }
 0x2ca   : > { %v3352_v7 = vpop.f32.mrf.mxu2 }
 0x2d2   : > { %v3354_v17 = vpop.f32.mrf.mxu2 }
 0x2da   : > { %v910_v18 = vpop.f32.mrf.mxu2 }
 0x2db   : > { %v911_v0 = vadd.f32 %v910_v18, %v3357_v36 }
 0x2e2   : > { %v912_v19 = vpop.f32.mrf.mxu2 }
 0x2ea   : > { %v915_v21 = vpop.f32.mrf.mxu2 }
 0x2f2   : > { %v917_v23 = vpop.f32.mrf.mxu2 }
 0x2fa   : > { %v920_v24 = vpop.f32.mrf.mxu2 }
 0x302   : > { %v922_v29 = vpop.f32.mrf.mxu2 }
 0x303   : > { %v923_v55 = vadd.f32 %v922_v29, %v3357_v36  ;;  %v921_v29 = vadd.f32 %v920_v24, %v3357_v36 }
 0x305   : > { %v971_v60 = vmax.f32 %v923_v55, 0.0  ;;  %v970_v18 = vmax.f32 %v921_v29, 0.0 }
 0x30a   : > { %v925_v31 = vpop.f32.mrf.mxu2 }
 0x30b   : > { %v926_v48 = vadd.f32 %v925_v31, %v3357_v36  ;;  %v966_v31 = vmax.f32 %v911_v0, 0.0 }
 0x30d   : > { %v972_v52 = vmax.f32 %v926_v48, 0.0 }
 0x312   : > { %v927_v32 = vpop.f32.mrf.mxu2 }
 0x313   : > { %v928_v24 = vadd.f32 %v927_v32, %v3357_v36  ;;  %v883_v32 = vadd.f32 %v3321_v20, %v3357_v36 }
 0x31a   : > { %v930_v28 = vpop.f32.mrf.mxu2 }
 0x322   : > { %v932_v33 = vpop.f32.mrf.mxu2 }
 0x323   : > { %v933_v1 = vadd.f32 %v932_v33, %v3357_v36  ;;  %v918_v33 = vadd.f32 %v917_v23, %v3357_v36  ;;  %v913_v23 = vadd.f32 %v912_v19, %v3357_v36  ;;  %v903_v19 = vadd.f32 %v3349_v3, %v3357_v36 }
 0x324   : > { %v3406_v3 = vperm.slane %v3271_v25, 2 }
 0x325   : > { %v969_v48 = vmax.f32 %v918_v33, 0.0  ;;  %v967_v55 = vmax.f32 %v913_v23, 0.0 }
 0x32a   : > { %v935_v37 = vpop.f32.mrf.mxu2 }
 0x32b   : > { %v936_v40 = vadd.f32 %v935_v37, %v3357_v36  ;;  %v975_v37 = vmax.f32 %v933_v1, 0.0 }
 0x32d   : > { %v976_v41 = vmax.f32 %v936_v40, 0.0 }
 0x32f   : > { %1018 = vrot.lane.b32.xlu2 %v976_v41, %s3051_s11 }
 0x332   : > { %v937_v43 = vpop.f32.mrf.mxu2 }
 0x333   : > { %v938_v44 = vadd.f32 %v937_v43, %v3357_v36 }
 0x335   : > { %v977_v47 = vmax.f32 %v938_v44, 0.0 }
 0x337   : > { %1020 = vrot.lane.b32.xlu2 %v977_v47, %s3051_s11  ;;  %v931_v47 = vadd.f32 %v930_v28, %v3357_v36 }
 0x33a   : > { %v940_v49 = vpop.f32.mrf.mxu2 }
 0x33b   : > { %v941_v51 = vadd.f32 %v940_v49, %v3357_v36  ;;  %v974_v49 = vmax.f32 %v931_v47, 0.0  ;;  %v896_v47 = vadd.f32 %v3338_v50, %v3357_v36 }
 0x33d   : > { %v978_v54 = vmax.f32 %v941_v51, 0.0  ;;  %v973_v51 = vmax.f32 %v928_v24, 0.0  ;;  %v891_v24 = vadd.f32 %v3331_v39, %v3357_v36 }
 0x33f   : > { %1022 = vrot.lane.b32.xlu1 %v978_v54, %s3051_s11  ;;  %1010 = vrot.lane.b32.xlu2 %v972_v52, %s3051_s11  ;;  %v916_v52 = vadd.f32 %v915_v21, %v3357_v36  ;;  %v906_v21 = vadd.f32 %v3352_v7, %v3357_v36  ;;  %v898_v7 = vadd.f32 %v3342_v56, %v3357_v36  ;;  %v958_v39 = vmax.f32 %v891_v24, 0.0 }
 0x341   : > { %v968_v54 = vmax.f32 %v916_v52, 0.0  ;;  %v964_v29 = vmax.f32 %v906_v21, 0.0  ;;  %v961_v52 = vmax.f32 %v898_v7, 0.0 }
 0x342   : > { %v942_v57 = vpop.f32.mrf.mxu2 }
 0x343   : > { %v943_v59 = vadd.f32 %v942_v57, %v3357_v36 }
 0x345   : > { %v979_v63 = vmax.f32 %v943_v59, 0.0 }
 0x347   : > { %1024 = vrot.lane.b32.xlu1 %v979_v63, %s3051_s11  ;;  %1008 = vrot.lane.b32.xlu2 %v971_v60, %s3051_s11 }
 0x34a   : > { %v945_v4 = vpop.f32.mrf.mxu2 }
 0x34b   : > { %v946_v5 = vadd.f32 %v945_v4, %v3357_v36  ;;  %v881_v4 = vadd.f32 %v3317_v6, %v3357_v36 }
 0x34d   : > { %v980_v40 = vmax.f32 %v946_v5, 0.0  ;;  %v908_v5 = vadd.f32 %v3354_v17, %v3357_v36  ;;  %v954_v20 = vmax.f32 %v881_v4, 0.0 }
 0x34f   : > { %1016 = vrot.lane.b32.xlu1 %v975_v37, %s3051_s11  ;;  %998 = vrot.lane.b32.xlu2 %v966_v31, %s3051_s11  ;;  %v955_v37 = vmax.f32 %v883_v32, 0.0  ;;  %v893_v32 = vadd.f32 %v3335_v45, %v3357_v36 }
 0x350   : > { %1026 = vrot.lane.b32.xlu0 %v980_v40, %s3051_s11  ;;  %v901_v40 = vadd.f32 %v3345_v61, %v3357_v36 }
 0x352   : > { %v947_v41 = vpop.f32.mrf.mxu2 }
 0x353   : > { %v948_v43 = vadd.f32 %v947_v41, %v3357_v36 }
 0x355   : > { %v981_v44 = vmax.f32 %v948_v43, 0.0  ;;  %v963_v43 = vmax.f32 %v903_v19, 0.0 }
 0x357   : > { %1006 = vrot.lane.b32.xlu1 %v970_v18, %s3051_s11  ;;  %v965_v18 = vmax.f32 %v908_v5, 0.0 }
 0x358   : > { %1028 = vrot.lane.b32.xlu0 %v981_v44, %s3051_s11 }
 0x35f   : > { %1004 = vrot.lane.b32.xlu1 %v969_v48, %s3051_s11  ;;  %v962_v48 = vmax.f32 %v901_v40, 0.0 }
 0x360   : > { %1014 = vrot.lane.b32.xlu0 %v974_v49, %s3051_s11 }
 0x368   : > { %1012 = vrot.lane.b32.xlu0 %v973_v51, %s3051_s11 }
 0x370   : > { %1002 = vrot.lane.b32.xlu0 %v968_v54, %s3051_s11 }
 0x378   : > { %1000 = vrot.lane.b32.xlu0 %v967_v55, %s3051_s11 }
 0x389   : > { %v1019_v28 = vpop.permute.xlu2 %1018 }
 0x391   : > { %v1021_v57 = vpop.permute.xlu2 %1020 }
 0x399   : > { %v1011_v63 = vpop.permute.xlu2 %1010 }
 0x3a1   : > { %v1009_v31 = vpop.permute.xlu2 %1008 }
 0x3a2   : > { %v1051_v41 = vadd.f32 %v1009_v31, %v955_v37  ;;  %v959_v37 = vmax.f32 %v893_v32, 0.0 }
 0x3a4   : > { %v1068_v56 = vadd.f32 %v3406_v3, %v1051_v41 }
 0x3b1   : > { %v1023_v59 = vpop.permute.xlu1 %1022 }
 0x3b2   : > { %v1058_v54 = vadd.f32 %v1023_v59, %v962_v48  ;;  %v886_v59 = vadd.f32 %v3324_v27, %v3357_v36 }
 0x3b4   : > { %v1075_v5 = vadd.f32 %v3406_v3, %v1058_v54  ;;  %v873_v54 = vadd.f32 %v3307_v58, %v3357_v36  ;;  %v2895_v58 = vld [vmem:[%s3945_s3 + $0x2c] sm:$0xff] }
 0x3b5   : > { %1264 = vmatpush.bf16.msrb.mxu1 %v2895_v58 }
 0x3b9   : > { %v1025_v60 = vpop.permute.xlu1 %1024 }
 0x3ba   : > { %v1059_v61 = vadd.f32 %v1025_v60, %v963_v43  ;;  %v1057_v60 = vadd.f32 %v1021_v57, %v961_v52  ;;  %v888_v57 = vadd.f32 %v3328_v35, %v3357_v36  ;;  %v876_v35 = vadd.f32 %v3310_v62, %v3357_v36 }
 0x3bc   : > { %v1076_v21 = vadd.f32 %v3406_v3, %v1059_v61  ;;  %v1074_v40 = vadd.f32 %v3406_v3, %v1057_v60  ;;  %v952_v24 = vmax.f32 %v876_v35, 0.0  ;;  %v951_v60 = vmax.f32 %v873_v54, 0.0 }
 0x3be   : > { %v1085_v45 = vpack.c.bf16 %v1076_v21, %v1075_v5 }
 0x3c1   : > { %v1017_v0 = vpop.permute.xlu1 %1016 }
 0x3c2   : > { %v1027_v1 = vpop.permute.xlu0 %1026  ;;  %v1055_v41 = vadd.f32 %v1017_v0, %v959_v37 }
 0x3c3   : > { %v1060_v6 = vadd.f32 %v1027_v1, %v964_v29  ;;  %v960_v1 = vmax.f32 %v896_v47, 0.0 }
 0x3c4   : > { %v1072_v27 = vadd.f32 %v3406_v3, %v1055_v41 }
 0x3c5   : > { %v1077_v23 = vadd.f32 %v3406_v3, %v1060_v6  ;;  %v1056_v19 = vadd.f32 %v1019_v28, %v960_v1  ;;  %v956_v28 = vmax.f32 %v886_v59, 0.0 }
 0x3c7   : > { %v1052_v6 = vadd.f32 %v1011_v63, %v956_v28 }
 0x3c9   : > { %v1007_v44 = vpop.permute.xlu1 %1006  ;;  %v1069_v0 = vadd.f32 %v3406_v3, %v1052_v6 }
 0x3ca   : > { %v1050_v33 = vadd.f32 %v1007_v44, %v954_v20  ;;  %v1029_v17 = vpop.permute.xlu0 %1028  ;;  %v1073_v20 = vadd.f32 %v3406_v3, %v1056_v19 }
 0x3cb   : > { %v1061_v49 = vadd.f32 %v1029_v17, %v965_v18  ;;  %v957_v18 = vmax.f32 %v888_v57, 0.0 }
 0x3cc   : > { %v1067_v51 = vadd.f32 %v3406_v3, %v1050_v33  ;;  %v1084_v43 = vpack.c.bf16 %v1074_v40, %v1073_v20  ;;  %v878_v33 = vadd.f32 %v3314_v2, %v3357_v36  ;;  %v871_v2 = vadd.f32 %v3303_v53, %v3357_v36  ;;  %v2898_v20 = vld [vmem:[%s3945_s3 + $0x44] sm:$0xff] }
 0x3cd   : > { %v1078_v55 = vadd.f32 %v3406_v3, %v1061_v49 }
 0x3ce   : > { %v1081_v50 = vpack.c.bf16 %v1068_v56, %v1067_v51  ;;  %v953_v49 = vmax.f32 %v878_v33, 0.0  ;;  %v950_v32 = vmax.f32 %v871_v2, 0.0 }
 0x3cf   : > { %v1086_v4 = vpack.c.bf16 %v1078_v55, %v1077_v23  ;;  %v999_v55 = vpop.permute.xlu2 %998 }
 0x3d0   : > { %v1046_v21 = vadd.f32 %v999_v55, %v950_v32 }
 0x3d1   : > { %1087 = vmatpush.bf16.msrb.mxu3 %v1086_v4  ;;  %v1005_v61 = vpop.permute.xlu1 %1004 }
 0x3d2   : > { %v1015_v31 = vpop.permute.xlu0 %1014  ;;  %v1049_v56 = vadd.f32 %v1005_v61, %v953_v49  ;;  %v1063_v19 = vadd.f32 %v3406_v3, %v1046_v21 }
 0x3d3   : > { %v1054_v29 = vadd.f32 %v1015_v31, %v958_v39 }
 0x3d4   : > { %v1066_v62 = vadd.f32 %v3406_v3, %v1049_v56 }
 0x3d5   : > { %1088 = vmatpush.bf16.msrb.mxu3 %v1085_v45  ;;  %v1071_v7 = vadd.f32 %v3406_v3, %v1054_v29 }
 0x3d7   : > { %v1083_v47 = vpack.c.bf16 %v1072_v27, %v1071_v7 }
 0x3d9   : > { %1089 = vmatpush.bf16.msrb.mxu3 %v1084_v43 }
 0x3da   : > { %v1013_v44 = vpop.permute.xlu0 %1012 }
 0x3db   : > { %v1053_v17 = vadd.f32 %v1013_v44, %v957_v18 }
 0x3dd   : > { %v1070_v48 = vadd.f32 %v3406_v3, %v1053_v17  ;;  %1090 = vmatpush.bf16.msrb.mxu3 %v1083_v47 }
 0x3df   : > { %v1082_v63 = vpack.c.bf16 %v1070_v48, %v1069_v0 }
 0x3e1   : > { %1091 = vmatpush.bf16.msrb.mxu3 %v1082_v63 }
 0x3e2   : > { %v1003_v51 = vpop.permute.xlu0 %1002 }
 0x3e3   : > { %v1048_v52 = vadd.f32 %v1003_v51, %v952_v24 }
 0x3e5   : > { %v1065_v23 = vadd.f32 %v3406_v3, %v1048_v52  ;;  %1092 = vmatpush.bf16.msrb.mxu3 %v1081_v50 }
 0x3e7   : > { %v1080_v1 = vpack.c.bf16 %v1066_v62, %v1065_v23 }
 0x3e9   : > { %1093 = vmatpush.bf16.msrb.mxu3 %v1080_v1 }
 0x3ea   : > { %v1001_v4 = vpop.permute.xlu0 %1000 }
 0x3eb   : > { %v1047_v39 = vadd.f32 %v1001_v4, %v951_v60 }
 0x3ed   : > { %v1064_v53 = vadd.f32 %v3406_v3, %v1047_v39 }
 0x3ef   : > { %v1079_v5 = vpack.c.bf16 %v1064_v53, %v1063_v19 }
 0x3f1   : > { %1094 = vmatpush.bf16.msrb.mxu3 %v1079_v5 }
 0x3f4   : > { %1095 = vmatmul.bf16.vlgmr.msrb.gmra.mxu3 %v3174_v8  ;;  %v2894_v8 = vld [vmem:[%s3945_s3 + $0x24] sm:$0xff] }
 0x3f5   : > { %1265 = vmatpush.bf16.msrb.mxu1 %v2894_v8 }
 0x404   : > { %1100 = vmatmul.bf16.gmra.mxu3 %v3178_v9 }
 0x414   : > { %1105 = vmatmul.bf16.gmra.mxu3 %v3182_v10 }
 0x424   : > { %1110 = vmatmul.bf16.gmra.mxu3 %v3186_v11 }
 0x434   : > { %1115 = vmatmul.bf16.gmra.mxu3 %v3190_v12 }
 0x444   : > { %1120 = vmatmul.bf16.gmra.mxu3 %v3194_v13 }
 0x454   : > { %1125 = vmatmul.bf16.gmra.mxu3 %v3198_v14 }
 0x464   : > { %1130 = vmatmul.bf16.gmra.mxu3 %v3202_v15 }
 0x474   : > { %1135 = vmatmul.bf16.gmra.mxu3 %v3206_v16 }
 0x477   : > { %v1096_v9 = vpop.f32.mrf.mxu3 }
 0x47f   : > { %v1098_v10 = vpop.f32.mrf.mxu3 }
 0x480   : > { %v1176_v11 = vpack.c.bf16 %v1098_v10, %v1096_v9 }
 0x482   : > { %2724 = vmatmul.msk.bf16.vlgmr.msrb.gmra.mxu1 %vm1209_vm3, %v1176_v11 }
 0x484   : > { %1140 = vmatmul.bf16.gmra.mxu3 %v3213_v22 }
 0x487   : > { %v1101_v12 = vpop.f32.mrf.mxu3 }
 0x48f   : > { %v1103_v13 = vpop.f32.mrf.mxu3 }
 0x490   : > { %v1177_v14 = vpack.c.bf16 %v1103_v13, %v1101_v12 }
 0x492   : > { %2725 = vmatmul.msk.bf16.gmra.mxu1 %vm1209_vm3, %v1177_v14 }
 0x494   : > { %1145 = vmatmul.bf16.gmra.mxu3 %v3217_v26 }
 0x497   : > { %v1106_v36 = vpop.f32.mrf.mxu3 }
 0x49f   : > { %v1108_v3 = vpop.f32.mrf.mxu3 }
 0x4a0   : > { %v1178_v15 = vpack.c.bf16 %v1108_v3, %v1106_v36 }
 0x4a2   : > { %2726 = vmatmul.msk.bf16.gmra.mxu1 %vm1209_vm3, %v1178_v15 }
 0x4a4   : > { %1150 = vmatmul.bf16.gmra.mxu3 %v3222_v30  ;;  %v2899_v30 = vld [vmem:[%s3945_s3 + $0x4c] sm:$0xff] }
 0x4a5   : > { %1480 = vmatpush.bf16.msra.mxu2 %v2899_v30 }
 0x4a7   : > { %v1111_v16 = vpop.f32.mrf.mxu3 }
 0x4a9   : > { %1481 = vmatpush.bf16.msra.mxu2 %v2898_v20 }
 0x4af   : > { %v1113_v50 = vpop.f32.mrf.mxu3 }
 0x4b0   : > { %v1179_v59 = vpack.c.bf16 %v1113_v50, %v1111_v16 }
 0x4b2   : > { %2727 = vmatmul.msk.bf16.gmra.mxu1 %vm1209_vm3, %v1179_v59 }
 0x4b4   : > { %1155 = vmatmul.bf16.gmra.mxu3 %v3227_v34 }
 0x4b7   : > { %v1116_v22 = vpop.f32.mrf.mxu3 }
 0x4bf   : > { %v1118_v31 = vpop.f32.mrf.mxu3 }
 0x4c0   : > { %v1180_v37 = vpack.c.bf16 %v1118_v31, %v1116_v22 }
 0x4c2   : > { %2728 = vmatmul.msk.bf16.gmra.mxu1 %vm1209_vm3, %v1180_v37 }
 0x4c4   : > { %1160 = vmatmul.bf16.gmra.mxu3 %v3232_v38  ;;  %v2897_v38 = vld [vmem:[%s3945_s3 + $0x3c] sm:$0xff] }
 0x4c5   : > { %1482 = vmatpush.bf16.msra.mxu2 %v2897_v38 }
 0x4c7   : > { %v1121_v26 = vpop.f32.mrf.mxu3 }
 0x4cf   : > { %v1123_v40 = vpop.f32.mrf.mxu3 }
 0x4d0   : > { %v1181_v29 = vpack.c.bf16 %v1123_v40, %v1121_v26 }
 0x4d2   : > { %2729 = vmatmul.msk.bf16.gmra.mxu1 %vm1209_vm3, %v1181_v29 }
 0x4d4   : > { %1165 = vmatmul.bf16.gmra.mxu3 %v3237_v42  ;;  %v2896_v42 = vld [vmem:[%s3945_s3 + $0x34] sm:$0xff] }
 0x4d5   : > { %1483 = vmatpush.bf16.msra.mxu2 %v2896_v42 }
 0x4d7   : > { %v1126_v34 = vpop.f32.mrf.mxu3 }
 0x4df   : > { %v1128_v45 = vpop.f32.mrf.mxu3 }
 0x4e0   : > { %v1182_v57 = vpack.c.bf16 %v1128_v45, %v1126_v34 }
 0x4e2   : > { %2730 = vmatmul.msk.bf16.gmra.mxu1 %vm1209_vm3, %v1182_v57 }
 0x4e4   : > { %1170 = vmatmul.bf16.gmra.mxu3 %v3242_v46  ;;  %v3485_v46 = vperm.slane %v3271_v25, 3 }
 0x4e7   : > { %v1131_v41 = vpop.f32.mrf.mxu3 }
 0x4ef   : > { %v1133_v28 = vpop.f32.mrf.mxu3 }
 0x4f0   : > { %v1183_v7 = vpack.c.bf16 %v1133_v28, %v1131_v41 }
 0x4f2   : > { %2731 = vmatmul.msk.bf16.gmra.mxu1 %vm1209_vm3, %v1183_v7 }
 0x4f7   : > { %v1136_v43 = vpop.f32.mrf.mxu3 }
 0x4ff   : > { %v1138_v18 = vpop.f32.mrf.mxu3  ;;  %v1267_v6 = vpop.f32.mrf.mxu1 }
 0x500   : > { %v1184_v27 = vpack.c.bf16 %v1138_v18, %v1136_v43  ;;  %v1268_v44 = vadd.f32 %v1267_v6, %v3485_v46 }
 0x502   : > { %2732 = vmatmul.msk.bf16.gmra.mxu1 %vm1209_vm3, %v1184_v27  ;;  %v1347_v35 = vmax.f32 %v1268_v44, 0.0 }
 0x507   : > { %v1141_v33 = vpop.f32.mrf.mxu3  ;;  %v1269_v17 = vpop.f32.mrf.mxu1 }
 0x508   : > { %v1270_v47 = vadd.f32 %v1269_v17, %v3485_v46 }
 0x50a   : > { %v1348_v0 = vmax.f32 %v1270_v47, 0.0 }
 0x50c   : > { %v1379_v48 = vpack.c.bf16 %v1348_v0, %v1347_v35 }
 0x50e   : > { %2756 = vmatmul.msk.bf16.vlgmr.msra.gmra.mxu2 %vm812_vm2, %v1379_v48 }
 0x50f   : > { %v1143_v61 = vpop.f32.mrf.mxu3  ;;  %v1272_v49 = vpop.f32.mrf.mxu1 }
 0x510   : > { %v1185_v63 = vpack.c.bf16 %v1143_v61, %v1141_v33  ;;  %v1273_v25 = vadd.f32 %v1272_v49, %v3485_v46 }
 0x512   : > { %2733 = vmatmul.msk.bf16.gmra.mxu1 %vm1209_vm3, %v1185_v63  ;;  %v1349_v2 = vmax.f32 %v1273_v25, 0.0 }
 0x517   : > { %v1146_v24 = vpop.f32.mrf.mxu3  ;;  %v1274_v56 = vpop.f32.mrf.mxu1 }
 0x518   : > { %v1275_v51 = vadd.f32 %v1274_v56, %v3485_v46 }
 0x51a   : > { %v1350_v52 = vmax.f32 %v1275_v51, 0.0 }
 0x51c   : > { %v1380_v54 = vpack.c.bf16 %v1350_v52, %v1349_v2 }
 0x51e   : > { %2757 = vmatmul.msk.bf16.gmra.mxu2 %vm812_vm2, %v1380_v54 }
 0x51f   : > { %v1148_v62 = vpop.f32.mrf.mxu3  ;;  %v1277_v23 = vpop.f32.mrf.mxu1 }
 0x520   : > { %v1186_v55 = vpack.c.bf16 %v1148_v62, %v1146_v24  ;;  %v1278_v32 = vadd.f32 %v1277_v23, %v3485_v46 }
 0x522   : > { %2734 = vmatmul.msk.bf16.gmra.mxu1 %vm1209_vm3, %v1186_v55  ;;  %v1351_v4 = vmax.f32 %v1278_v32, 0.0 }
 0x527   : > { %v1151_v1 = vpop.f32.mrf.mxu3  ;;  %v1279_v60 = vpop.f32.mrf.mxu1 }
 0x528   : > { %v1280_v21 = vadd.f32 %v1279_v60, %v3485_v46 }
 0x52a   : > { %v1352_v39 = vmax.f32 %v1280_v21, 0.0 }
 0x52c   : > { %v1381_v19 = vpack.c.bf16 %v1352_v39, %v1351_v4 }
 0x52e   : > { %2758 = vmatmul.msk.bf16.gmra.mxu2 %vm812_vm2, %v1381_v19 }
 0x52f   : > { %v1153_v53 = vpop.f32.mrf.mxu3  ;;  %v1282_v5 = vpop.f32.mrf.mxu1 }
 0x530   : > { %v1187_v58 = vpack.c.bf16 %v1153_v53, %v1151_v1  ;;  %v1283_v8 = vadd.f32 %v1282_v5, %v3485_v46 }
 0x532   : > { %2735 = vmatmul.msk.bf16.gmra.mxu1 %vm1209_vm3, %v1187_v58  ;;  %v1353_v12 = vmax.f32 %v1283_v8, 0.0 }
 0x537   : > { %v1156_v9 = vpop.f32.mrf.mxu3  ;;  %v1284_v10 = vpop.f32.mrf.mxu1 }
 0x538   : > { %v1285_v11 = vadd.f32 %v1284_v10, %v3485_v46 }
 0x53a   : > { %v1354_v13 = vmax.f32 %v1285_v11, 0.0 }
 0x53c   : > { %v1382_v14 = vpack.c.bf16 %v1354_v13, %v1353_v12 }
 0x53e   : > { %2759 = vmatmul.msk.bf16.gmra.mxu2 %vm812_vm2, %v1382_v14 }
 0x53f   : > { %v1158_v36 = vpop.f32.mrf.mxu3  ;;  %v1287_v3 = vpop.f32.mrf.mxu1 }
 0x540   : > { %v1188_v15 = vpack.c.bf16 %v1158_v36, %v1156_v9  ;;  %v1288_v16 = vadd.f32 %v1287_v3, %v3485_v46 }
 0x542   : > { %2736 = vmatmul.msk.bf16.gmra.mxu1 %vm1209_vm3, %v1188_v15  ;;  %v1355_v31 = vmax.f32 %v1288_v16, 0.0 }
 0x547   : > { %v1161_v50 = vpop.f32.mrf.mxu3  ;;  %v1289_v59 = vpop.f32.mrf.mxu1 }
 0x548   : > { %v1290_v22 = vadd.f32 %v1289_v59, %v3485_v46 }
 0x54a   : > { %v1356_v37 = vmax.f32 %v1290_v22, 0.0 }
 0x54c   : > { %v1383_v26 = vpack.c.bf16 %v1356_v37, %v1355_v31 }
 0x54e   : > { %2760 = vmatmul.msk.bf16.gmra.mxu2 %vm812_vm2, %v1383_v26 }
 0x54f   : > { %v1163_v40 = vpop.f32.mrf.mxu3  ;;  %v1292_v29 = vpop.f32.mrf.mxu1 }
 0x550   : > { %v1189_v30 = vpack.c.bf16 %v1163_v40, %v1161_v50  ;;  %v1293_v34 = vadd.f32 %v1292_v29, %v3485_v46 }
 0x552   : > { %2737 = vmatmul.msk.bf16.gmra.mxu1 %vm1209_vm3, %v1189_v30  ;;  %v1357_v38 = vmax.f32 %v1293_v34, 0.0 }
 0x557   : > { %v1166_v45 = vpop.f32.mrf.mxu3  ;;  %v1294_v57 = vpop.f32.mrf.mxu1 }
 0x558   : > { %v1295_v20 = vadd.f32 %v1294_v57, %v3485_v46 }
 0x55a   : > { %v1358_v41 = vmax.f32 %v1295_v20, 0.0 }
 0x55c   : > { %v1384_v42 = vpack.c.bf16 %v1358_v41, %v1357_v38 }
 0x55e   : > { %2761 = vmatmul.msk.bf16.gmra.mxu2 %vm812_vm2, %v1384_v42 }
 0x55f   : > { %v1168_v28 = vpop.f32.mrf.mxu3  ;;  %v1297_v7 = vpop.f32.mrf.mxu1 }
 0x560   : > { %v1190_v43 = vpack.c.bf16 %v1168_v28, %v1166_v45  ;;  %v1298_v18 = vadd.f32 %v1297_v7, %v3485_v46 }
 0x562   : > { %2738 = vmatmul.msk.bf16.gmra.mxu1 %vm1209_vm3, %v1190_v43  ;;  %v1359_v33 = vmax.f32 %v1298_v18, 0.0 }
 0x567   : > { %v1171_v6 = vpop.f32.mrf.mxu3  ;;  %v1299_v27 = vpop.f32.mrf.mxu1 }
 0x568   : > { %v1300_v44 = vadd.f32 %v1299_v27, %v3485_v46 }
 0x56a   : > { %v1360_v17 = vmax.f32 %v1300_v44, 0.0 }
 0x56c   : > { %v1385_v47 = vpack.c.bf16 %v1360_v17, %v1359_v33 }
 0x56e   : > { %2762 = vmatmul.msk.bf16.gmra.mxu2 %vm812_vm2, %v1385_v47 }
 0x56f   : > { %v1173_v35 = vpop.f32.mrf.mxu3  ;;  %v1302_v0 = vpop.f32.mrf.mxu1 }
 0x570   : > { %v1191_v48 = vpack.c.bf16 %v1173_v35, %v1171_v6  ;;  %v1303_v61 = vadd.f32 %v1302_v0, %v3485_v46 }
 0x572   : > { %2739 = vmatmul.msk.bf16.gmra.mxu1 %vm1209_vm3, %v1191_v48  ;;  %v1361_v25 = vmax.f32 %v1303_v61, 0.0 }
 0x577   : > { %v1304_v49 = vpop.f32.mrf.mxu1 }
 0x578   : > { %v1305_v63 = vadd.f32 %v1304_v49, %v3485_v46 }
 0x57a   : > { %v1362_v24 = vmax.f32 %v1305_v63, 0.0 }
 0x57c   : > { %v1386_v56 = vpack.c.bf16 %v1362_v24, %v1361_v25 }
 0x57e   : > { %2763 = vmatmul.msk.bf16.gmra.mxu2 %vm812_vm2, %v1386_v56 }
 0x57f   : > { %v1307_v51 = vpop.f32.mrf.mxu1 }
 0x580   : > { %v1308_v2 = vadd.f32 %v1307_v51, %v3485_v46 }
 0x582   : > { %v1363_v62 = vmax.f32 %v1308_v2, 0.0 }
 0x587   : > { %v1309_v52 = vpop.f32.mrf.mxu1 }
 0x588   : > { %v1310_v54 = vadd.f32 %v1309_v52, %v3485_v46 }
 0x58a   : > { %v1364_v23 = vmax.f32 %v1310_v54, 0.0 }
 0x58c   : > { %v1387_v55 = vpack.c.bf16 %v1364_v23, %v1363_v62 }
 0x58e   : > { %2764 = vmatmul.msk.bf16.gmra.mxu2 %vm812_vm2, %v1387_v55 }
 0x58f   : > { %v1312_v32 = vpop.f32.mrf.mxu1 }
 0x590   : > { %v1313_v60 = vadd.f32 %v1312_v32, %v3485_v46 }
 0x591   : > { %v3522_v1 = vpop.f32.mrf.mxu2 }
 0x592   : > { %v1365_v19 = vmax.f32 %v1313_v60, 0.0 }
 0x597   : > { %v1314_v21 = vpop.f32.mrf.mxu1 }
 0x598   : > { %v1315_v4 = vadd.f32 %v1314_v21, %v3485_v46 }
 0x599   : > { %v3526_v39 = vpop.f32.mrf.mxu2 }
 0x59a   : > { %v1366_v53 = vmax.f32 %v1315_v4, 0.0 }
 0x59c   : > { %v1388_v5 = vpack.c.bf16 %v1366_v53, %v1365_v19 }
 0x59e   : > { %2765 = vmatmul.msk.bf16.gmra.mxu2 %vm812_vm2, %v1388_v5 }
 0x59f   : > { %v1317_v58 = vpop.f32.mrf.mxu1 }
 0x5a0   : > { %v1318_v9 = vadd.f32 %v1317_v58, %v3485_v46 }
 0x5a1   : > { %v3529_v8 = vpop.f32.mrf.mxu2 }
 0x5a2   : > { %v1367_v13 = vmax.f32 %v1318_v9, 0.0 }
 0x5a7   : > { %v1319_v10 = vpop.f32.mrf.mxu1 }
 0x5a8   : > { %v1320_v11 = vadd.f32 %v1319_v10, %v3485_v46 }
 0x5a9   : > { %v3533_v12 = vpop.f32.mrf.mxu2 }
 0x5aa   : > { %v1368_v14 = vmax.f32 %v1320_v11, 0.0 }
 0x5ac   : > { %v1389_v36 = vpack.c.bf16 %v1368_v14, %v1367_v13  ;;  %v3578_v13 = vld [vmem:[%s3946_s4] sm:$0xff] }
 0x5ad   : > { %v3581_v14 = vperm.slane %v3578_v13, 4 }
 0x5ae   : > { %2766 = vmatmul.msk.bf16.gmra.mxu2 %vm812_vm2, %v1389_v36 }
 0x5af   : > { %v1322_v3 = vpop.f32.mrf.mxu1 }
 0x5b0   : > { %v1323_v16 = vadd.f32 %v1322_v3, %v3485_v46 }
 0x5b1   : > { %v3536_v15 = vpop.f32.mrf.mxu2 }
 0x5b2   : > { %v1369_v31 = vmax.f32 %v1323_v16, 0.0 }
 0x5b7   : > { %v1324_v50 = vpop.f32.mrf.mxu1 }
 0x5b8   : > { %v1325_v59 = vadd.f32 %v1324_v50, %v3485_v46 }
 0x5b9   : > { %v3540_v22 = vpop.f32.mrf.mxu2 }
 0x5ba   : > { %v1370_v37 = vmax.f32 %v1325_v59, 0.0 }
 0x5bc   : > { %v1390_v26 = vpack.c.bf16 %v1370_v37, %v1369_v31 }
 0x5be   : > { %2767 = vmatmul.msk.bf16.gmra.mxu2 %vm812_vm2, %v1390_v26 }
 0x5bf   : > { %v1327_v40 = vpop.f32.mrf.mxu1 }
 0x5c0   : > { %v1328_v30 = vadd.f32 %v1327_v40, %v3485_v46 }
 0x5c1   : > { %v3543_v29 = vpop.f32.mrf.mxu2 }
 0x5c2   : > { %v1371_v20 = vmax.f32 %v1328_v30, 0.0 }
 0x5c7   : > { %v1329_v34 = vpop.f32.mrf.mxu1 }
 0x5c8   : > { %v1330_v45 = vadd.f32 %v1329_v34, %v3485_v46 }
 0x5c9   : > { %v3547_v57 = vpop.f32.mrf.mxu2 }
 0x5ca   : > { %v1372_v38 = vmax.f32 %v1330_v45, 0.0 }
 0x5cc   : > { %v1391_v41 = vpack.c.bf16 %v1372_v38, %v1371_v20 }
 0x5ce   : > { %2768 = vmatmul.msk.bf16.gmra.mxu2 %vm812_vm2, %v1391_v41 }
 0x5cf   : > { %v1332_v42 = vpop.f32.mrf.mxu1 }
 0x5d0   : > { %v1333_v7 = vadd.f32 %v1332_v42, %v3485_v46 }
 0x5d1   : > { %v3550_v28 = vpop.f32.mrf.mxu2 }
 0x5d2   : > { %v1373_v27 = vmax.f32 %v1333_v7, 0.0 }
 0x5d7   : > { %v1334_v43 = vpop.f32.mrf.mxu1 }
 0x5d8   : > { %v1335_v18 = vadd.f32 %v1334_v43, %v3485_v46 }
 0x5d9   : > { %v3554_v6 = vpop.f32.mrf.mxu2 }
 0x5da   : > { %v1374_v44 = vmax.f32 %v1335_v18, 0.0 }
 0x5dc   : > { %v1392_v33 = vpack.c.bf16 %v1374_v44, %v1373_v27 }
 0x5de   : > { %2769 = vmatmul.msk.bf16.gmra.mxu2 %vm812_vm2, %v1392_v33 }
 0x5df   : > { %v1337_v17 = vpop.f32.mrf.mxu1 }
 0x5e0   : > { %v1338_v35 = vadd.f32 %v1337_v17, %v3485_v46 }
 0x5e1   : > { %v3557_v47 = vpop.f32.mrf.mxu2 }
 0x5e2   : > { %v1375_v49 = vmax.f32 %v1338_v35, 0.0 }
 0x5e7   : > { %v1339_v0 = vpop.f32.mrf.mxu1 }
 0x5e8   : > { %v1340_v48 = vadd.f32 %v1339_v0, %v3485_v46 }
 0x5e9   : > { %v3561_v61 = vpop.f32.mrf.mxu2 }
 0x5ea   : > { %v1376_v63 = vmax.f32 %v1340_v48, 0.0 }
 0x5ec   : > { %v1393_v25 = vpack.c.bf16 %v1376_v63, %v1375_v49 }
 0x5ee   : > { %2770 = vmatmul.msk.bf16.gmra.mxu2 %vm812_vm2, %v1393_v25 }
 0x5ef   : > { %v1342_v24 = vpop.f32.mrf.mxu1 }
 0x5f0   : > { %v1343_v51 = vadd.f32 %v1342_v24, %v3485_v46 }
 0x5f1   : > { %v3564_v56 = vpop.f32.mrf.mxu2 }
 0x5f2   : > { %v1377_v62 = vmax.f32 %v1343_v51, 0.0 }
 0x5f7   : > { %v1344_v2 = vpop.f32.mrf.mxu1 }
 0x5f8   : > { %v1345_v52 = vadd.f32 %v1344_v2, %v3485_v46 }
 0x5f9   : > { %v3568_v54 = vpop.f32.mrf.mxu2 }
 0x5fa   : > { %v1378_v23 = vmax.f32 %v1345_v52, 0.0 }
 0x5fc   : > { %v1394_v55 = vpack.c.bf16 %v1378_v23, %v1377_v62 }
 0x5fe   : > { %2771 = vmatmul.msk.bf16.gmra.mxu2 %vm812_vm2, %v1394_v55 }
 0x601   : > { %v3571_v32 = vpop.f32.mrf.mxu2 }
 0x609   : > { %v3573_v60 = vpop.f32.mrf.mxu2 }
 0x611   : > { %v1525_v21 = vpop.f32.mrf.mxu2 }
 0x612   : > { %v1526_v27 = vadd.f32 %v1525_v21, %v3581_v14 }
 0x614   : > { %v1581_v35 = vmax.f32 %v1526_v27, 0.0 }
 0x619   : > { %v1527_v4 = vpop.f32.mrf.mxu2 }
 0x61a   : > { %v1528_v55 = vadd.f32 %v1527_v4, %v3581_v14 }
 0x621   : > { %v1530_v19 = vpop.f32.mrf.mxu2 }
 0x622   : > { %v1531_v2 = vadd.f32 %v1530_v19, %v3581_v14 }
 0x624   : > { %v1583_v62 = vmax.f32 %v1531_v2, 0.0 }
 0x629   : > { %v1532_v53 = vpop.f32.mrf.mxu2 }
 0x62a   : > { %v1533_v23 = vadd.f32 %v1532_v53, %v3581_v14 }
 0x62c   : > { %v1584_v21 = vmax.f32 %v1533_v23, 0.0  ;;  %v1501_v23 = vadd.f32 %v3543_v29, %v3581_v14  ;;  %v1493_v29 = vadd.f32 %v3533_v12, %v3581_v14 }
 0x631   : > { %v1535_v5 = vpop.f32.mrf.mxu2 }
 0x632   : > { %v1536_v51 = vadd.f32 %v1535_v5, %v3581_v14 }
 0x634   : > { %v1585_v52 = vmax.f32 %v1536_v51, 0.0 }
 0x639   : > { %v1537_v58 = vpop.f32.mrf.mxu2 }
 0x63a   : > { %v1538_v41 = vadd.f32 %v1537_v58, %v3581_v14  ;;  %v1582_v58 = vmax.f32 %v1528_v55, 0.0 }
 0x63c   : > { %v1586_v43 = vmax.f32 %v1538_v41, 0.0 }
 0x641   : > { %v1540_v9 = vpop.f32.mrf.mxu2 }
 0x642   : > { %v1541_v30 = vadd.f32 %v1540_v9, %v3581_v14 }
 0x644   : > { %v1587_v20 = vmax.f32 %v1541_v30, 0.0  ;;  %v1496_v30 = vadd.f32 %v3536_v15, %v3581_v14 }
 0x649   : > { %v1542_v10 = vpop.f32.mrf.mxu2 }
 0x64a   : > { %v1543_v63 = vadd.f32 %v1542_v10, %v3581_v14 }
 0x64c   : > { %v1588_v24 = vmax.f32 %v1543_v63, 0.0 }
 0x651   : > { %v1545_v46 = vpop.f32.mrf.mxu2 }
 0x652   : > { %v1546_v44 = vadd.f32 %v1545_v46, %v3581_v14  ;;  %v1516_v46 = vadd.f32 %v3564_v56, %v3581_v14  ;;  %v1521_v56 = vadd.f32 %v3571_v32, %v3581_v14  ;;  %v1511_v32 = vadd.f32 %v3557_v47, %v3581_v14 }
 0x654   : > { %v1589_v48 = vmax.f32 %v1546_v44, 0.0  ;;  %v1575_v47 = vmax.f32 %v1511_v32, 0.0  ;;  %v2969_v32 = vld [vmem:[%s3171_s15 + $0x10] sm:$0xff] }
 0x659   : > { %v1547_v11 = vpop.f32.mrf.mxu2 }
 0x65a   : > { %v1548_v49 = vadd.f32 %v1547_v11, %v3581_v14  ;;  %v1518_v11 = vadd.f32 %v3568_v54, %v3581_v14 }
 0x65c   : > { %v1590_v25 = vmax.f32 %v1548_v49, 0.0  ;;  %v1578_v53 = vmax.f32 %v1518_v11, 0.0 }
 0x661   : > { %v1550_v36 = vpop.f32.mrf.mxu2 }
 0x662   : > { %v1551_v3 = vadd.f32 %v1550_v36, %v3581_v14  ;;  %v1577_v36 = vmax.f32 %v1516_v46, 0.0 }
 0x664   : > { %v1591_v16 = vmax.f32 %v1551_v3, 0.0 }
 0x666   : > { %1633 = vrot.lane.b32.xlu2 %v1591_v16, %s3051_s11 }
 0x669   : > { %v1552_v50 = vpop.f32.mrf.mxu2 }
 0x66a   : > { %v1553_v59 = vadd.f32 %v1552_v50, %v3581_v14  ;;  %v1523_v50 = vadd.f32 %v3573_v60, %v3581_v14 }
 0x66c   : > { %v1592_v31 = vmax.f32 %v1553_v59, 0.0  ;;  %v3622_v59 = vperm.slane %v3578_v13, 5 }
 0x66e   : > { %1635 = vrot.lane.b32.xlu0 %v1592_v31, %s3051_s11 }
 0x671   : > { %v1555_v37 = vpop.f32.mrf.mxu2 }
 0x672   : > { %v1556_v26 = vadd.f32 %v1555_v37, %v3581_v14 }
 0x674   : > { %v1593_v40 = vmax.f32 %v1556_v26, 0.0  ;;  %v1498_v26 = vadd.f32 %v3540_v22, %v3581_v14 }
 0x676   : > { %1637 = vrot.lane.b32.xlu0 %v1593_v40, %s3051_s11 }
 0x679   : > { %v1557_v34 = vpop.f32.mrf.mxu2 }
 0x67a   : > { %v1558_v45 = vadd.f32 %v1557_v34, %v3581_v14  ;;  %v1580_v34 = vmax.f32 %v1523_v50, 0.0 }
 0x67c   : > { %v1594_v38 = vmax.f32 %v1558_v45, 0.0  ;;  %v1570_v45 = vmax.f32 %v1498_v26, 0.0 }
 0x67e   : > { %1639 = vrot.lane.b32.xlu1 %v1594_v38, %s3051_s11  ;;  %1625 = vrot.lane.b32.xlu0 %v1587_v20, %s3051_s11  ;;  %v1513_v20 = vadd.f32 %v3561_v61, %v3581_v14  ;;  %v1579_v38 = vmax.f32 %v1521_v56, 0.0  ;;  %v1506_v61 = vadd.f32 %v3550_v28, %v3581_v14 }
 0x680   : > { %v1573_v51 = vmax.f32 %v1506_v61, 0.0 }
 0x681   : > { %v1560_v42 = vpop.f32.mrf.mxu2 }
 0x682   : > { %v1561_v7 = vadd.f32 %v1560_v42, %v3581_v14  ;;  %v1569_v42 = vmax.f32 %v1496_v30, 0.0 }
 0x684   : > { %v1595_v18 = vmax.f32 %v1561_v7, 0.0 }
 0x686   : > { %1623 = vrot.lane.b32.xlu0 %v1586_v43, %s3051_s11  ;;  %1641 = vrot.lane.b32.xlu1 %v1595_v18, %s3051_s11 }
 0x689   : > { %v1562_v33 = vpop.f32.mrf.mxu2 }
 0x68a   : > { %v1563_v17 = vadd.f32 %v1562_v33, %v3581_v14  ;;  %v1576_v33 = vmax.f32 %v1513_v20, 0.0 }
 0x68c   : > { %v1596_v0 = vmax.f32 %v1563_v17, 0.0 }
 0x68e   : > { %1613 = vrot.lane.b32.xlu0 %v1581_v35, %s3051_s11  ;;  %1643 = vrot.lane.b32.xlu2 %v1596_v0, %s3051_s11 }
 0x68f   : > { %1629 = vrot.lane.b32.xlu1 %v1589_v48, %s3051_s11  ;;  %v1508_v48 = vadd.f32 %v3554_v6, %v3581_v14  ;;  %v1503_v6 = vadd.f32 %v3547_v57, %v3581_v14 }
 0x691   : > { %v1574_v2 = vmax.f32 %v1508_v48, 0.0 }
 0x696   : > { %1631 = vrot.lane.b32.xlu2 %v1590_v25, %s3051_s11 }
 0x697   : > { %1627 = vrot.lane.b32.xlu1 %v1588_v24, %s3051_s11 }
 0x69e   : > { %1621 = vrot.lane.b32.xlu2 %v1585_v52, %s3051_s11 }
 0x69f   : > { %1617 = vrot.lane.b32.xlu1 %v1583_v62, %s3051_s11 }
 0x6a6   : > { %1619 = vrot.lane.b32.xlu2 %v1584_v21, %s3051_s11 }
 0x6a7   : > { %1615 = vrot.lane.b32.xlu1 %v1582_v58, %s3051_s11 }
 0x6c0   : > { %v1634_v9 = vpop.permute.xlu2 %1633 }
 0x6c1   : > { %v1671_v24 = vadd.f32 %v1634_v9, %v1575_v47  ;;  %v2976_v47 = vld [vmem:[%s3171_s15 + $0x48] sm:$0xff] }
 0x6c3   : > { %v1688_v55 = vadd.f32 %v3622_v59, %v1671_v24  ;;  %v2977_v24 = vld [vmem:[%s3171_s15 + $0x50] sm:$0xff] }
 0x6e0   : > { %v1636_v5 = vpop.permute.xlu0 %1635 }
 0x6e1   : > { %v1672_v49 = vadd.f32 %v1636_v5, %v1576_v33  ;;  %v1571_v5 = vmax.f32 %v1501_v23, 0.0  ;;  %v2900_v33 = vld [vmem:[%s3945_s3 + $0x54] sm:$0xff] }
 0x6e3   : > { %v1689_v52 = vadd.f32 %v3622_v59, %v1672_v49 }
 0x6e5   : > { %v1699_v9 = vpack.c.bf16 %v1689_v52, %v1688_v55 }
 0x6e8   : > { %v1638_v10 = vpop.permute.xlu0 %1637  ;;  %v1644_v19 = vpop.permute.xlu2 %1643 }
 0x6e9   : > { %v1673_v3 = vadd.f32 %v1638_v10, %v1577_v36  ;;  %v1676_v41 = vadd.f32 %v1644_v19, %v1580_v34  ;;  %v1572_v19 = vmax.f32 %v1503_v6, 0.0 }
 0x6eb   : > { %v1690_v54 = vadd.f32 %v3622_v59, %v1673_v3  ;;  %v1693_v15 = vadd.f32 %v3622_v59, %v1676_v41  ;;  %v1491_v3 = vadd.f32 %v3529_v8, %v3581_v14 }
 0x6ed   : > { %v1567_v26 = vmax.f32 %v1491_v3, 0.0 }
 0x6f0   : > { %v1640_v4 = vpop.permute.xlu1 %1639  ;;  %v1626_v16 = vpop.permute.xlu0 %1625 }
 0x6f1   : > { %v1674_v31 = vadd.f32 %v1640_v4, %v1578_v53  ;;  %v1632_v37 = vpop.permute.xlu2 %1631  ;;  %v1667_v46 = vadd.f32 %v1626_v16, %v1571_v5  ;;  %v2980_v5 = vld [vmem:[%s3171_s15 + $0x68] sm:$0xff] }
 0x6f2   : > { %v1670_v21 = vadd.f32 %v1632_v37, %v1574_v2 }
 0x6f3   : > { %v1691_v40 = vadd.f32 %v3622_v59, %v1674_v31  ;;  %v1684_v57 = vadd.f32 %v3622_v59, %v1667_v46  ;;  %v1568_v31 = vmax.f32 %v1493_v29, 0.0  ;;  %v2905_v46 = vld [vmem:[%s3945_s3 + $0x7c] sm:$0xff] }
 0x6f4   : > { %v1687_v10 = vadd.f32 %v3622_v59, %v1670_v21  ;;  %v2979_v21 = vld [vmem:[%s3171_s15 + $0x60] sm:$0xff]  ;;  %2094 = vmatpush.bf16.msra.mxu1 %v2905_v46 }
 0x6f5   : > { %v1700_v60 = vpack.c.bf16 %v1691_v40, %v1690_v54  ;;  %v1486_v54 = vadd.f32 %v3522_v1, %v3581_v14  ;;  %v1488_v40 = vadd.f32 %v3526_v39, %v3581_v14 }
 0x6f7   : > { %v1566_v20 = vmax.f32 %v1488_v40, 0.0 }
 0x6f8   : > { %v1624_v22 = vpop.permute.xlu0 %1623  ;;  %v1642_v7 = vpop.permute.xlu1 %1641 }
 0x6f9   : > { %v1666_v43 = vadd.f32 %v1624_v22, %v1570_v45  ;;  %v1622_v18 = vpop.permute.xlu2 %1621  ;;  %v1675_v27 = vadd.f32 %v1642_v7, %v1579_v38  ;;  %v2967_v22 = vld [vmem:[%s3171_s15] sm:$0xff]  ;;  %v2968_v7 = vld [vmem:[%s3171_s15 + $0x8] sm:$0xff] }
 0x6fa   : > { %v1665_v44 = vadd.f32 %v1622_v18, %v1569_v42  ;;  %v2971_v18 = vld [vmem:[%s3171_s15 + $0x20] sm:$0xff] }
 0x6fb   : > { %v1683_v17 = vadd.f32 %v3622_v59, %v1666_v43  ;;  %v1692_v35 = vadd.f32 %v3622_v59, %v1675_v27  ;;  %v2970_v43 = vld [vmem:[%s3171_s15 + $0x18] sm:$0xff] }
 0x6fc   : > { %v1682_v0 = vadd.f32 %v3622_v59, %v1665_v44  ;;  %v2901_v27 = vld [vmem:[%s3945_s3 + $0x5c] sm:$0xff]  ;;  %v2973_v44 = vld [vmem:[%s3171_s15 + $0x30] sm:$0xff] }
 0x6fd   : > { %v1701_v63 = vpack.c.bf16 %v1693_v15, %v1692_v35  ;;  %1878 = vmatpush.bf16.msra.mxu3 %v2901_v27  ;;  %v2974_v15 = vld [vmem:[%s3171_s15 + $0x38] sm:$0xff]  ;;  %v2975_v35 = vld [vmem:[%s3171_s15 + $0x40] sm:$0xff] }
 0x6fe   : > { %v1696_v25 = vpack.c.bf16 %v1683_v17, %v1682_v0 }
 0x6ff   : > { %1702 = vmatpush.bf16.msra.mxu0 %v1701_v63 }
 0x700   : > { %v1614_v34 = vpop.permute.xlu0 %1613 }
 0x701   : > { %v1630_v62 = vpop.permute.xlu1 %1629  ;;  %v1620_v50 = vpop.permute.xlu2 %1619  ;;  %1879 = vmatpush.bf16.msra.mxu3 %v2900_v33 }
 0x702   : > { %v1669_v28 = vadd.f32 %v1630_v62, %v1573_v51  ;;  %v1664_v56 = vadd.f32 %v1620_v50, %v1568_v31  ;;  %v2978_v62 = vld [vmem:[%s3171_s15 + $0x58] sm:$0xff]  ;;  %v2903_v50 = vld [vmem:[%s3945_s3 + $0x6c] sm:$0xff] }
 0x703   : > { %1703 = vmatpush.bf16.msra.mxu0 %v1700_v60  ;;  %v1565_v60 = vmax.f32 %v1486_v54, 0.0 }
 0x704   : > { %v1686_v58 = vadd.f32 %v3622_v59, %v1669_v28  ;;  %v1681_v8 = vadd.f32 %v3622_v59, %v1664_v56 }
 0x705   : > { %v1661_v38 = vadd.f32 %v1614_v34, %v1565_v60 }
 0x706   : > { %v1698_v36 = vpack.c.bf16 %v1687_v10, %v1686_v58 }
 0x707   : > { %1704 = vmatpush.bf16.msra.mxu0 %v1699_v9  ;;  %v1678_v39 = vadd.f32 %v3622_v59, %v1661_v38 }
 0x709   : > { %v1628_v11 = vpop.permute.xlu1 %1627 }
 0x70a   : > { %v1668_v53 = vadd.f32 %v1628_v11, %v1572_v19 }
 0x70b   : > { %1705 = vmatpush.bf16.msra.mxu0 %v1698_v36  ;;  %v2981_v36 = vld [vmem:[%s3171_s15 + $0x70] sm:$0xff] }
 0x70c   : > { %v1685_v4 = vadd.f32 %v3622_v59, %v1668_v53 }
 0x70e   : > { %v1697_v37 = vpack.c.bf16 %v1685_v4, %v1684_v57  ;;  %v2904_v57 = vld [vmem:[%s3945_s3 + $0x74] sm:$0xff] }
 0x70f   : > { %2095 = vmatpush.bf16.msra.mxu1 %v2904_v57  ;;  %v2982_v4 = vld [vmem:[%s3171_s15 + $0x78] sm:$0xff] }
 0x710   : > { %1706 = vmatpush.bf16.msra.mxu0 %v1697_v37  ;;  %v2902_v37 = vld [vmem:[%s3945_s3 + $0x64] sm:$0xff] }
 0x711   : > { %v1618_v16 = vpop.permute.xlu1 %1617 }
 0x712   : > { %v1663_v12 = vadd.f32 %v1618_v16, %v1567_v26 }
 0x713   : > { %2096 = vmatpush.bf16.msra.mxu1 %v2903_v50 }
 0x714   : > { %v1680_v30 = vadd.f32 %v3622_v59, %v1663_v12  ;;  %1707 = vmatpush.bf16.msra.mxu0 %v1696_v25 }
 0x716   : > { %v1695_v45 = vpack.c.bf16 %v1681_v8, %v1680_v30  ;;  %v3710_v8 = vperm.slane %v3578_v13, 6 }
 0x717   : > { %2097 = vmatpush.bf16.msra.mxu1 %v2902_v37 }
 0x718   : > { %1708 = vmatpush.bf16.msra.mxu0 %v1695_v45 }
 0x719   : > { %v1616_v1 = vpop.permute.xlu1 %1615 }
 0x71a   : > { %v1662_v41 = vadd.f32 %v1616_v1, %v1566_v20 }
 0x71c   : > { %v1679_v14 = vadd.f32 %v3622_v59, %v1662_v41  ;;  %v2972_v59 = vld [vmem:[%s3171_s15 + $0x28] sm:$0xff] }
 0x71e   : > { %v1694_v42 = vpack.c.bf16 %v1679_v14, %v1678_v39 }
 0x720   : > { %1709 = vmatpush.bf16.msra.mxu0 %v1694_v42 }
 0x723   : > { %1710 = vmatmul.bf16.vlgmr.msra.gmra.mxu0 %v2967_v22 }
 0x733   : > { %1715 = vmatmul.bf16.gmra.mxu0 %v2968_v7 }
 0x743   : > { %1720 = vmatmul.bf16.gmra.mxu0 %v2969_v32 }
 0x753   : > { %1725 = vmatmul.bf16.gmra.mxu0 %v2970_v43 }
 0x763   : > { %1730 = vmatmul.bf16.gmra.mxu0 %v2971_v18 }
 0x773   : > { %1735 = vmatmul.bf16.gmra.mxu0 %v2972_v59 }
 0x783   : > { %1740 = vmatmul.bf16.gmra.mxu0 %v2973_v44 }
 0x793   : > { %1745 = vmatmul.bf16.gmra.mxu0 %v2974_v15 }
 0x7a0   : > { %v1711_v17 = vpop.f32.mrf.mxu0 }
 0x7a3   : > { %1750 = vmatmul.bf16.gmra.mxu0 %v2975_v35 }
 0x7a8   : > { %v1713_v61 = vpop.f32.mrf.mxu0 }
 0x7a9   : > { %v1791_v0 = vpack.c.bf16 %v1713_v61, %v1711_v17 }
 0x7ab   : > { %2780 = vmatmul.msk.bf16.vlgmr.msra.gmra.mxu3 %vm1209_vm3, %v1791_v0 }
 0x7b0   : > { %v1716_v48 = vpop.f32.mrf.mxu0 }
 0x7b3   : > { %1755 = vmatmul.bf16.gmra.mxu0 %v2976_v47 }
 0x7b8   : > { %v1718_v49 = vpop.f32.mrf.mxu0 }
 0x7b9   : > { %v1792_v63 = vpack.c.bf16 %v1718_v49, %v1716_v48 }
 0x7bb   : > { %2781 = vmatmul.msk.bf16.gmra.mxu3 %vm1209_vm3, %v1792_v63 }
 0x7c0   : > { %v1721_v25 = vpop.f32.mrf.mxu0 }
 0x7c3   : > { %1760 = vmatmul.bf16.gmra.mxu0 %v2977_v24 }
 0x7c8   : > { %v1723_v51 = vpop.f32.mrf.mxu0 }
 0x7c9   : > { %v1793_v2 = vpack.c.bf16 %v1723_v51, %v1721_v25 }
 0x7cb   : > { %2782 = vmatmul.msk.bf16.gmra.mxu3 %vm1209_vm3, %v1793_v2 }
 0x7d0   : > { %v1726_v52 = vpop.f32.mrf.mxu0 }
 0x7d3   : > { %1765 = vmatmul.bf16.gmra.mxu0 %v2978_v62 }
 0x7d8   : > { %v1728_v23 = vpop.f32.mrf.mxu0 }
 0x7d9   : > { %v1794_v28 = vpack.c.bf16 %v1728_v23, %v1726_v52 }
 0x7db   : > { %2783 = vmatmul.msk.bf16.gmra.mxu3 %vm1209_vm3, %v1794_v28 }
 0x7e0   : > { %v1731_v55 = vpop.f32.mrf.mxu0 }
 0x7e3   : > { %1770 = vmatmul.bf16.gmra.mxu0 %v2979_v21 }
 0x7e8   : > { %v1733_v6 = vpop.f32.mrf.mxu0 }
 0x7e9   : > { %v1795_v58 = vpack.c.bf16 %v1733_v6, %v1731_v55 }
 0x7eb   : > { %2784 = vmatmul.msk.bf16.gmra.mxu3 %vm1209_vm3, %v1795_v58 }
 0x7f0   : > { %v1736_v9 = vpop.f32.mrf.mxu0 }
 0x7f3   : > { %1775 = vmatmul.bf16.gmra.mxu0 %v2980_v5 }
 0x7f8   : > { %v1738_v10 = vpop.f32.mrf.mxu0 }
 0x7f9   : > { %v1796_v19 = vpack.c.bf16 %v1738_v10, %v1736_v9 }
 0x7fb   : > { %2785 = vmatmul.msk.bf16.gmra.mxu3 %vm1209_vm3, %v1796_v19 }
 0x800   : > { %v1741_v11 = vpop.f32.mrf.mxu0 }
 0x803   : > { %1780 = vmatmul.bf16.gmra.mxu0 %v2981_v36 }
 0x808   : > { %v1743_v29 = vpop.f32.mrf.mxu0 }
 0x809   : > { %v1797_v53 = vpack.c.bf16 %v1743_v29, %v1741_v11 }
 0x80b   : > { %2786 = vmatmul.msk.bf16.gmra.mxu3 %vm1209_vm3, %v1797_v53 }
 0x810   : > { %v1746_v3 = vpop.f32.mrf.mxu0 }
 0x813   : > { %1785 = vmatmul.bf16.gmra.mxu0 %v2982_v4 }
 0x818   : > { %v1748_v31 = vpop.f32.mrf.mxu0 }
 0x819   : > { %v1798_v26 = vpack.c.bf16 %v1748_v31, %v1746_v3 }
 0x81b   : > { %2787 = vmatmul.msk.bf16.gmra.mxu3 %vm1209_vm3, %v1798_v26 }
 0x820   : > { %v1751_v56 = vpop.f32.mrf.mxu0 }
 0x828   : > { %v1753_v16 = vpop.f32.mrf.mxu0 }
 0x829   : > { %v1799_v54 = vpack.c.bf16 %v1753_v16, %v1751_v56 }
 0x82b   : > { %2788 = vmatmul.msk.bf16.gmra.mxu3 %vm1209_vm3, %v1799_v54 }
 0x82e   : > { %v1881_v12 = vpop.f32.mrf.mxu3 }
 0x82f   : > { %v1882_v30 = vadd.f32 %v1881_v12, %v3710_v8 }
 0x830   : > { %v1756_v40 = vpop.f32.mrf.mxu0 }
 0x831   : > { %v1961_v20 = vmax.f32 %v1882_v30, 0.0 }
 0x836   : > { %v1883_v34 = vpop.f32.mrf.mxu3 }
 0x837   : > { %v1884_v60 = vadd.f32 %v1883_v34, %v3710_v8 }
 0x838   : > { %v1758_v45 = vpop.f32.mrf.mxu0 }
 0x839   : > { %v1962_v38 = vmax.f32 %v1884_v60, 0.0  ;;  %v1800_v1 = vpack.c.bf16 %v1758_v45, %v1756_v40 }
 0x83b   : > { %v1993_v41 = vpack.c.bf16 %v1962_v38, %v1961_v20  ;;  %2789 = vmatmul.msk.bf16.gmra.mxu3 %vm1209_vm3, %v1800_v1 }
 0x83d   : > { %2812 = vmatmul.msk.bf16.vlgmr.msra.gmra.mxu1 %vm812_vm2, %v1993_v41 }
 0x83e   : > { %v1886_v39 = vpop.f32.mrf.mxu3 }
 0x83f   : > { %v1887_v42 = vadd.f32 %v1886_v39, %v3710_v8 }
 0x840   : > { %v1761_v14 = vpop.f32.mrf.mxu0 }
 0x841   : > { %v1963_v43 = vmax.f32 %v1887_v42, 0.0 }
 0x846   : > { %v1888_v22 = vpop.f32.mrf.mxu3 }
 0x847   : > { %v1889_v7 = vadd.f32 %v1888_v22, %v3710_v8 }
 0x848   : > { %v1763_v32 = vpop.f32.mrf.mxu0 }
 0x849   : > { %v1964_v18 = vmax.f32 %v1889_v7, 0.0  ;;  %v1801_v27 = vpack.c.bf16 %v1763_v32, %v1761_v14 }
 0x84b   : > { %v1994_v59 = vpack.c.bf16 %v1964_v18, %v1963_v43  ;;  %2790 = vmatmul.msk.bf16.gmra.mxu3 %vm1209_vm3, %v1801_v27 }
 0x84d   : > { %2813 = vmatmul.msk.bf16.gmra.mxu1 %vm812_vm2, %v1994_v59 }
 0x84e   : > { %v1891_v44 = vpop.f32.mrf.mxu3 }
 0x84f   : > { %v1892_v15 = vadd.f32 %v1891_v44, %v3710_v8 }
 0x850   : > { %v1766_v33 = vpop.f32.mrf.mxu0 }
 0x851   : > { %v1965_v0 = vmax.f32 %v1892_v15, 0.0 }
 0x856   : > { %v1893_v17 = vpop.f32.mrf.mxu3 }
 0x857   : > { %v1894_v35 = vadd.f32 %v1893_v17, %v3710_v8 }
 0x858   : > { %v1768_v61 = vpop.f32.mrf.mxu0 }
 0x859   : > { %v1966_v48 = vmax.f32 %v1894_v35, 0.0  ;;  %v1802_v47 = vpack.c.bf16 %v1768_v61, %v1766_v33 }
 0x85b   : > { %v1995_v49 = vpack.c.bf16 %v1966_v48, %v1965_v0  ;;  %2791 = vmatmul.msk.bf16.gmra.mxu3 %vm1209_vm3, %v1802_v47 }
 0x85d   : > { %2814 = vmatmul.msk.bf16.gmra.mxu1 %vm812_vm2, %v1995_v49 }
 0x85e   : > { %v1896_v63 = vpop.f32.mrf.mxu3 }
 0x85f   : > { %v1897_v24 = vadd.f32 %v1896_v63, %v3710_v8 }
 0x860   : > { %v1771_v25 = vpop.f32.mrf.mxu0 }
 0x861   : > { %v1967_v62 = vmax.f32 %v1897_v24, 0.0 }
 0x866   : > { %v1898_v51 = vpop.f32.mrf.mxu3 }
 0x867   : > { %v1899_v2 = vadd.f32 %v1898_v51, %v3710_v8 }
 0x868   : > { %v1773_v52 = vpop.f32.mrf.mxu0 }
 0x869   : > { %v1968_v23 = vmax.f32 %v1899_v2, 0.0  ;;  %v1803_v28 = vpack.c.bf16 %v1773_v52, %v1771_v25 }
 0x86b   : > { %v1996_v55 = vpack.c.bf16 %v1968_v23, %v1967_v62  ;;  %2792 = vmatmul.msk.bf16.gmra.mxu3 %vm1209_vm3, %v1803_v28 }
 0x86d   : > { %2815 = vmatmul.msk.bf16.gmra.mxu1 %vm812_vm2, %v1996_v55 }
 0x86e   : > { %v1901_v21 = vpop.f32.mrf.mxu3 }
 0x86f   : > { %v1902_v58 = vadd.f32 %v1901_v21, %v3710_v8 }
 0x870   : > { %v1776_v6 = vpop.f32.mrf.mxu0 }
 0x871   : > { %v1969_v19 = vmax.f32 %v1902_v58, 0.0 }
 0x876   : > { %v1903_v9 = vpop.f32.mrf.mxu3 }
 0x877   : > { %v1904_v5 = vadd.f32 %v1903_v9, %v3710_v8 }
 0x878   : > { %v1778_v10 = vpop.f32.mrf.mxu0 }
 0x879   : > { %v1970_v46 = vmax.f32 %v1904_v5, 0.0  ;;  %v1804_v11 = vpack.c.bf16 %v1778_v10, %v1776_v6 }
 0x87b   : > { %v1997_v36 = vpack.c.bf16 %v1970_v46, %v1969_v19  ;;  %2793 = vmatmul.msk.bf16.gmra.mxu3 %vm1209_vm3, %v1804_v11 }
 0x87d   : > { %2816 = vmatmul.msk.bf16.gmra.mxu1 %vm812_vm2, %v1997_v36 }
 0x87e   : > { %v1906_v29 = vpop.f32.mrf.mxu3 }
 0x87f   : > { %v1907_v3 = vadd.f32 %v1906_v29, %v3710_v8 }
 0x880   : > { %v1781_v53 = vpop.f32.mrf.mxu0 }
 0x881   : > { %v1971_v31 = vmax.f32 %v1907_v3, 0.0 }
 0x886   : > { %v1908_v57 = vpop.f32.mrf.mxu3 }
 0x887   : > { %v1909_v4 = vadd.f32 %v1908_v57, %v3710_v8 }
 0x888   : > { %v1783_v50 = vpop.f32.mrf.mxu0 }
 0x889   : > { %v1972_v37 = vmax.f32 %v1909_v4, 0.0  ;;  %v1805_v26 = vpack.c.bf16 %v1783_v50, %v1781_v53 }
 0x88b   : > { %v1998_v56 = vpack.c.bf16 %v1972_v37, %v1971_v31  ;;  %2794 = vmatmul.msk.bf16.gmra.mxu3 %vm1209_vm3, %v1805_v26 }
 0x88d   : > { %2817 = vmatmul.msk.bf16.gmra.mxu1 %vm812_vm2, %v1998_v56 }
 0x88e   : > { %v1911_v16 = vpop.f32.mrf.mxu3 }
 0x88f   : > { %v1912_v12 = vadd.f32 %v1911_v16, %v3710_v8 }
 0x890   : > { %v1786_v54 = vpop.f32.mrf.mxu0 }
 0x891   : > { %v1973_v60 = vmax.f32 %v1912_v12, 0.0 }
 0x896   : > { %v1913_v40 = vpop.f32.mrf.mxu3 }
 0x897   : > { %v1914_v30 = vadd.f32 %v1913_v40, %v3710_v8 }
 0x898   : > { %v1788_v34 = vpop.f32.mrf.mxu0 }
 0x899   : > { %v1974_v45 = vmax.f32 %v1914_v30, 0.0  ;;  %v1806_v20 = vpack.c.bf16 %v1788_v34, %v1786_v54 }
 0x89b   : > { %v1999_v38 = vpack.c.bf16 %v1974_v45, %v1973_v60  ;;  %2795 = vmatmul.msk.bf16.gmra.mxu3 %vm1209_vm3, %v1806_v20 }
 0x89d   : > { %2818 = vmatmul.msk.bf16.gmra.mxu1 %vm812_vm2, %v1999_v38 }
 0x89e   : > { %v1916_v1 = vpop.f32.mrf.mxu3 }
 0x89f   : > { %v1917_v41 = vadd.f32 %v1916_v1, %v3710_v8 }
 0x8a1   : > { %v1975_v42 = vmax.f32 %v1917_v41, 0.0 }
 0x8a6   : > { %v1918_v39 = vpop.f32.mrf.mxu3 }
 0x8a7   : > { %v1919_v14 = vadd.f32 %v1918_v39, %v3710_v8 }
 0x8a9   : > { %v1976_v22 = vmax.f32 %v1919_v14, 0.0 }
 0x8ab   : > { %v2000_v7 = vpack.c.bf16 %v1976_v22, %v1975_v42 }
 0x8ad   : > { %2819 = vmatmul.msk.bf16.gmra.mxu1 %vm812_vm2, %v2000_v7 }
 0x8ae   : > { %v1921_v32 = vpop.f32.mrf.mxu3 }
 0x8af   : > { %v1922_v43 = vadd.f32 %v1921_v32, %v3710_v8 }
 0x8b1   : > { %v1977_v59 = vmax.f32 %v1922_v43, 0.0 }
 0x8b6   : > { %v1923_v18 = vpop.f32.mrf.mxu3 }
 0x8b7   : > { %v1924_v27 = vadd.f32 %v1923_v18, %v3710_v8 }
 0x8b9   : > { %v1978_v44 = vmax.f32 %v1924_v27, 0.0 }
 0x8ba   : > { %v3745_v33 = vpop.f32.mrf.mxu1 }
 0x8bb   : > { %v2001_v15 = vpack.c.bf16 %v1978_v44, %v1977_v59 }
 0x8bd   : > { %2820 = vmatmul.msk.bf16.gmra.mxu1 %vm812_vm2, %v2001_v15 }
 0x8be   : > { %v1926_v17 = vpop.f32.mrf.mxu3 }
 0x8bf   : > { %v1927_v61 = vadd.f32 %v1926_v17, %v3710_v8 }
 0x8c1   : > { %v1979_v47 = vmax.f32 %v1927_v61, 0.0 }
 0x8c2   : > { %v3748_v35 = vpop.f32.mrf.mxu1 }
 0x8c6   : > { %v1928_v0 = vpop.f32.mrf.mxu3 }
 0x8c7   : > { %v1929_v48 = vadd.f32 %v1928_v0, %v3710_v8 }
 0x8c9   : > { %v1980_v49 = vmax.f32 %v1929_v48, 0.0 }
 0x8ca   : > { %v3752_v63 = vpop.f32.mrf.mxu1 }
 0x8cb   : > { %v2002_v25 = vpack.c.bf16 %v1980_v49, %v1979_v47 }
 0x8cd   : > { %2821 = vmatmul.msk.bf16.gmra.mxu1 %vm812_vm2, %v2002_v25 }
 0x8ce   : > { %v1931_v24 = vpop.f32.mrf.mxu3 }
 0x8cf   : > { %v1932_v2 = vadd.f32 %v1931_v24, %v3710_v8 }
 0x8d1   : > { %v1981_v23 = vmax.f32 %v1932_v2, 0.0 }
 0x8d2   : > { %v3755_v51 = vpop.f32.mrf.mxu1 }
 0x8d6   : > { %v1933_v52 = vpop.f32.mrf.mxu3 }
 0x8d7   : > { %v1934_v62 = vadd.f32 %v1933_v52, %v3710_v8 }
 0x8d9   : > { %v1982_v28 = vmax.f32 %v1934_v62, 0.0 }
 0x8da   : > { %v3759_v55 = vpop.f32.mrf.mxu1 }
 0x8db   : > { %v2003_v21 = vpack.c.bf16 %v1982_v28, %v1981_v23 }
 0x8dd   : > { %2822 = vmatmul.msk.bf16.gmra.mxu1 %vm812_vm2, %v2003_v21 }
 0x8de   : > { %v1936_v6 = vpop.f32.mrf.mxu3 }
 0x8df   : > { %v1937_v9 = vadd.f32 %v1936_v6, %v3710_v8 }
 0x8e1   : > { %v1983_v19 = vmax.f32 %v1937_v9, 0.0 }
 0x8e2   : > { %v3762_v58 = vpop.f32.mrf.mxu1 }
 0x8e6   : > { %v1938_v5 = vpop.f32.mrf.mxu3 }
 0x8e7   : > { %v1939_v10 = vadd.f32 %v1938_v5, %v3710_v8 }
 0x8e9   : > { %v1984_v46 = vmax.f32 %v1939_v10, 0.0 }
 0x8ea   : > { %v3766_v11 = vpop.f32.mrf.mxu1 }
 0x8eb   : > { %v2004_v36 = vpack.c.bf16 %v1984_v46, %v1983_v19 }
 0x8ed   : > { %2823 = vmatmul.msk.bf16.gmra.mxu1 %vm812_vm2, %v2004_v36 }
 0x8ee   : > { %v1941_v29 = vpop.f32.mrf.mxu3 }
 0x8ef   : > { %v1942_v3 = vadd.f32 %v1941_v29, %v3710_v8 }
 0x8f1   : > { %v1985_v50 = vmax.f32 %v1942_v3, 0.0 }
 0x8f2   : > { %v3769_v53 = vpop.f32.mrf.mxu1 }
 0x8f6   : > { %v1943_v57 = vpop.f32.mrf.mxu3 }
 0x8f7   : > { %v1944_v4 = vadd.f32 %v1943_v57, %v3710_v8 }
 0x8f9   : > { %v1986_v31 = vmax.f32 %v1944_v4, 0.0 }
 0x8fa   : > { %v3773_v37 = vpop.f32.mrf.mxu1 }
 0x8fb   : > { %v2005_v26 = vpack.c.bf16 %v1986_v31, %v1985_v50 }
 0x8fd   : > { %2824 = vmatmul.msk.bf16.gmra.mxu1 %vm812_vm2, %v2005_v26 }
 0x8fe   : > { %v1946_v56 = vpop.f32.mrf.mxu3 }
 0x8ff   : > { %v1947_v54 = vadd.f32 %v1946_v56, %v3710_v8 }
 0x901   : > { %v1987_v30 = vmax.f32 %v1947_v54, 0.0 }
 0x902   : > { %v3776_v16 = vpop.f32.mrf.mxu1 }
 0x906   : > { %v1948_v12 = vpop.f32.mrf.mxu3 }
 0x907   : > { %v1949_v40 = vadd.f32 %v1948_v12, %v3710_v8 }
 0x909   : > { %v1988_v34 = vmax.f32 %v1949_v40, 0.0 }
 0x90a   : > { %v3780_v60 = vpop.f32.mrf.mxu1 }
 0x90b   : > { %v2006_v45 = vpack.c.bf16 %v1988_v34, %v1987_v30 }
 0x90d   : > { %2825 = vmatmul.msk.bf16.gmra.mxu1 %vm812_vm2, %v2006_v45 }
 0x90e   : > { %v1951_v20 = vpop.f32.mrf.mxu3 }
 0x90f   : > { %v1952_v1 = vadd.f32 %v1951_v20, %v3710_v8 }
 0x911   : > { %v1989_v14 = vmax.f32 %v1952_v1, 0.0 }
 0x912   : > { %v3783_v38 = vpop.f32.mrf.mxu1 }
 0x916   : > { %v1953_v41 = vpop.f32.mrf.mxu3 }
 0x917   : > { %v1954_v39 = vadd.f32 %v1953_v41, %v3710_v8 }
 0x919   : > { %v1990_v42 = vmax.f32 %v1954_v39, 0.0 }
 0x91a   : > { %v3787_v22 = vpop.f32.mrf.mxu1 }
 0x91b   : > { %v2007_v7 = vpack.c.bf16 %v1990_v42, %v1989_v14 }
 0x91d   : > { %2826 = vmatmul.msk.bf16.gmra.mxu1 %vm812_vm2, %v2007_v7 }
 0x91e   : > { %v1956_v32 = vpop.f32.mrf.mxu3 }
 0x91f   : > { %v1957_v18 = vadd.f32 %v1956_v32, %v3710_v8 }
 0x921   : > { %v1991_v44 = vmax.f32 %v1957_v18, 0.0 }
 0x922   : > { %v3790_v43 = vpop.f32.mrf.mxu1 }
 0x926   : > { %v1958_v27 = vpop.f32.mrf.mxu3 }
 0x927   : > { %v1959_v59 = vadd.f32 %v1958_v27, %v3710_v8  ;;  %v3800_v8 = vperm.slane %v3578_v13, 7 }
 0x929   : > { %v1992_v15 = vmax.f32 %v1959_v59, 0.0 }
 0x92a   : > { %v3794_v17 = vpop.f32.mrf.mxu1 }
 0x92b   : > { %v2008_v61 = vpack.c.bf16 %v1992_v15, %v1991_v44 }
 0x92d   : > { %2827 = vmatmul.msk.bf16.gmra.mxu1 %vm812_vm2, %v2008_v61 }
 0x932   : > { %v3797_v0 = vpop.f32.mrf.mxu1 }
 0x93a   : > { %v2139_v48 = vpop.f32.mrf.mxu1 }
 0x93b   : > { %v2140_v40 = vadd.f32 %v2139_v48, %v3800_v8 }
 0x93d   : > { %v2195_v20 = vmax.f32 %v2140_v40, 0.0 }
 0x942   : > { %v2141_v47 = vpop.f32.mrf.mxu1 }
 0x943   : > { %v2142_v15 = vadd.f32 %v2141_v47, %v3800_v8 }
 0x945   : > { %v2196_v48 = vmax.f32 %v2142_v15, 0.0 }
 0x94a   : > { %v2144_v49 = vpop.f32.mrf.mxu1 }
 0x94b   : > { %v2145_v18 = vadd.f32 %v2144_v49, %v3800_v8  ;;  %v2125_v49 = vadd.f32 %v3780_v60, %v3800_v8  ;;  %v2132_v60 = vadd.f32 %v3790_v43, %v3800_v8  ;;  %v2115_v43 = vadd.f32 %v3766_v11, %v3800_v8 }
 0x94d   : > { %v2197_v59 = vmax.f32 %v2145_v18, 0.0  ;;  %v2189_v47 = vmax.f32 %v2125_v49, 0.0 }
 0x952   : > { %v2146_v25 = vpop.f32.mrf.mxu1 }
 0x953   : > { %v2147_v44 = vadd.f32 %v2146_v25, %v3800_v8 }
 0x955   : > { %v2198_v61 = vmax.f32 %v2147_v44, 0.0 }
 0x95a   : > { %v2149_v24 = vpop.f32.mrf.mxu1 }
 0x95b   : > { %v2150_v32 = vadd.f32 %v2149_v24, %v3800_v8  ;;  %v2127_v24 = vadd.f32 %v3783_v38, %v3800_v8  ;;  %v2130_v38 = vadd.f32 %v3787_v22, %v3800_v8 }
 0x95d   : > { %v2199_v27 = vmax.f32 %v2150_v32, 0.0 }
 0x962   : > { %v2151_v2 = vpop.f32.mrf.mxu1 }
 0x963   : > { %v2152_v31 = vadd.f32 %v2151_v2, %v3800_v8 }
 0x965   : > { %v2200_v54 = vmax.f32 %v2152_v31, 0.0 }
 0x96a   : > { %v2154_v52 = vpop.f32.mrf.mxu1 }
 0x96b   : > { %v2155_v13 = vadd.f32 %v2154_v52, %v3800_v8  ;;  %v3841_v52 = vld [vmem:[%s3946_s4 + $0x8] sm:$0xff] }
 0x96d   : > { %v2201_v4 = vmax.f32 %v2155_v13, 0.0 }
 0x972   : > { %v2156_v62 = vpop.f32.mrf.mxu1 }
 0x973   : > { %v2157_v14 = vadd.f32 %v2156_v62, %v3800_v8  ;;  %v2190_v62 = vmax.f32 %v2127_v24, 0.0  ;;  %v2908_v24 = vld [vmem:[%s3945_s3 + $0x8c] sm:$0xff] }
 0x974   : > { %2365 = vmatpush.bf16.msrb.mxu0 %v2908_v24 }
 0x975   : > { %v2202_v7 = vmax.f32 %v2157_v14, 0.0  ;;  %v2102_v14 = vadd.f32 %v3748_v35, %v3800_v8 }
 0x97a   : > { %v2159_v23 = vpop.f32.mrf.mxu1 }
 0x97b   : > { %v2160_v30 = vadd.f32 %v2159_v23, %v3800_v8  ;;  %v3844_v23 = vperm.slane %v3841_v52, 0 }
 0x97d   : > { %v2203_v41 = vmax.f32 %v2160_v30, 0.0 }
 0x982   : > { %v2161_v28 = vpop.f32.mrf.mxu1 }
 0x983   : > { %v2162_v39 = vadd.f32 %v2161_v28, %v3800_v8 }
 0x985   : > { %v2204_v42 = vmax.f32 %v2162_v39, 0.0  ;;  %v2137_v39 = vadd.f32 %v3797_v0, %v3800_v8  ;;  %v2122_v0 = vadd.f32 %v3776_v16, %v3800_v8  ;;  %v2907_v16 = vld [vmem:[%s3945_s3 + $0x84] sm:$0xff] }
 0x986   : > { %2366 = vmatpush.bf16.msrb.mxu0 %v2907_v16 }
 0x987   : > { %v2194_v32 = vmax.f32 %v2137_v39, 0.0 }
 0x98a   : > { %v2164_v21 = vpop.f32.mrf.mxu1 }
 0x98b   : > { %v2165_v6 = vadd.f32 %v2164_v21, %v3800_v8 }
 0x98d   : > { %v2205_v9 = vmax.f32 %v2165_v6, 0.0 }
 0x98f   : > { %2247 = vrot.lane.b32.xlu0 %v2205_v9, %s3051_s11 }
 0x992   : > { %v2166_v5 = vpop.f32.mrf.mxu1 }
 0x993   : > { %v2167_v10 = vadd.f32 %v2166_v5, %v3800_v8 }
 0x995   : > { %v2206_v19 = vmax.f32 %v2167_v10, 0.0 }
 0x997   : > { %2249 = vrot.lane.b32.xlu1 %v2206_v19, %s3051_s11  ;;  %v2192_v19 = vmax.f32 %v2132_v60, 0.0  ;;  %v2112_v60 = vadd.f32 %v3762_v58, %v3800_v8  ;;  %v2105_v58 = vadd.f32 %v3752_v63, %v3800_v8 }
 0x99a   : > { %v2169_v46 = vpop.f32.mrf.mxu1 }
 0x99b   : > { %v2170_v36 = vadd.f32 %v2169_v46, %v3800_v8 }
 0x99d   : > { %v2207_v29 = vmax.f32 %v2170_v36, 0.0  ;;  %v2191_v36 = vmax.f32 %v2130_v38, 0.0  ;;  %v2110_v38 = vadd.f32 %v3759_v55, %v3800_v8  ;;  %v2107_v55 = vadd.f32 %v3755_v51, %v3800_v8  ;;  %v2906_v51 = vld [vmem:[%s234_s9] sm:$0xff] }
 0x99f   : > { %2251 = vrot.lane.b32.xlu1 %v2207_v29, %s3051_s11 }
 0x9a2   : > { %v2171_v3 = vpop.f32.mrf.mxu1 }
 0x9a3   : > { %v2172_v57 = vadd.f32 %v2171_v3, %v3800_v8 }
 0x9a5   : > { %v2208_v50 = vmax.f32 %v2172_v57, 0.0 }
 0x9a7   : > { %2253 = vrot.lane.b32.xlu2 %v2208_v50, %s3051_s11  ;;  %2239 = vrot.lane.b32.xlu1 %v2201_v4, %s3051_s11  ;;  %v2117_v50 = vadd.f32 %v3769_v53, %v3800_v8  ;;  %v2100_v53 = vadd.f32 %v3745_v33, %v3800_v8 }
 0x9aa   : > { %v2174_v26 = vpop.f32.mrf.mxu1 }
 0x9ab   : > { %v2175_v56 = vadd.f32 %v2174_v26, %v3800_v8  ;;  %v2185_v26 = vmax.f32 %v2115_v43, 0.0 }
 0x9ad   : > { %v2209_v12 = vmax.f32 %v2175_v56, 0.0  ;;  %v2186_v56 = vmax.f32 %v2117_v50, 0.0 }
 0x9af   : > { %2237 = vrot.lane.b32.xlu1 %v2200_v54, %s3051_s11  ;;  %2255 = vrot.lane.b32.xlu2 %v2209_v12, %s3051_s11 }
 0x9b2   : > { %v2176_v34 = vpop.f32.mrf.mxu1 }
 0x9b3   : > { %v2177_v45 = vadd.f32 %v2176_v34, %v3800_v8 }
 0x9b5   : > { %v2210_v1 = vmax.f32 %v2177_v45, 0.0 }
 0x9b7   : > { %2227 = vrot.lane.b32.xlu1 %v2195_v20, %s3051_s11  ;;  %2257 = vrot.lane.b32.xlu0 %v2210_v1, %s3051_s11  ;;  %v2135_v1 = vadd.f32 %v3794_v17, %v3800_v8  ;;  %v2120_v17 = vadd.f32 %v3773_v37, %v3800_v8 }
 0x9b8   : > { %2243 = vrot.lane.b32.xlu2 %v2203_v41, %s3051_s11 }
 0x9b9   : > { %v2187_v37 = vmax.f32 %v2120_v17, 0.0 }
 0x9bf   : > { %2245 = vrot.lane.b32.xlu0 %v2204_v42, %s3051_s11  ;;  %v2193_v42 = vmax.f32 %v2135_v1, 0.0  ;;  %v2343_v1 = vperm.slane %v3841_v52, 1 }
 0x9c0   : > { %2241 = vrot.lane.b32.xlu2 %v2202_v7, %s3051_s11  ;;  %v2179_v7 = vmax.f32 %v2100_v53, 0.0 }
 0x9c7   : > { %2235 = vrot.lane.b32.xlu0 %v2199_v27, %s3051_s11  ;;  %v2180_v27 = vmax.f32 %v2102_v14, 0.0 }
 0x9c8   : > { %2231 = vrot.lane.b32.xlu2 %v2197_v59, %s3051_s11 }
 0x9cf   : > { %2233 = vrot.lane.b32.xlu0 %v2198_v61, %s3051_s11 }
 0x9d0   : > { %2229 = vrot.lane.b32.xlu2 %v2196_v48, %s3051_s11 }
 0xa01   : > { %v2254_v2 = vpop.permute.xlu2 %2253  ;;  %v2248_v25 = vpop.permute.xlu0 %2247 }
 0xa02   : > { %v2285_v28 = vadd.f32 %v2248_v25, %v2189_v47  ;;  %v2288_v29 = vadd.f32 %v2254_v2, %v2192_v19 }
 0xa04   : > { %v3851_v5 = vadd.f32 %v3844_v23, %v2285_v28  ;;  %v2305_v22 = vadd.f32 %v3844_v23, %v2288_v29  ;;  %v2188_v28 = vmax.f32 %v2122_v0, 0.0  ;;  %v2184_v29 = vmax.f32 %v2112_v60, 0.0 }
 0xa09   : > { %v2250_v21 = vpop.permute.xlu1 %2249  ;;  %v2256_v6 = vpop.permute.xlu2 %2255 }
 0xa0a   : > { %v2286_v9 = vadd.f32 %v2250_v21, %v2190_v62  ;;  %v2289_v18 = vadd.f32 %v2256_v6, %v2193_v42 }
 0xa0c   : > { %v3854_v10 = vadd.f32 %v3844_v23, %v2286_v9  ;;  %v2306_v2 = vadd.f32 %v3844_v23, %v2289_v18 }
 0xa0e   : > { %v2315_v46 = vpack.c.bf16 %v3854_v10, %v3851_v5 }
 0xa11   : > { %v2252_v13 = vpop.permute.xlu1 %2251 }
 0xa12   : > { %v2287_v3 = vadd.f32 %v2252_v13, %v2191_v36  ;;  %v2244_v57 = vpop.permute.xlu2 %2243 }
 0xa13   : > { %v2283_v21 = vadd.f32 %v2244_v57, %v2187_v37 }
 0xa14   : > { %v2304_v4 = vadd.f32 %v3844_v23, %v2287_v3  ;;  %v2183_v3 = vmax.f32 %v2110_v38, 0.0 }
 0xa15   : > { %v2300_v19 = vadd.f32 %v3844_v23, %v2283_v21 }
 0xa16   : > { %v2316_v31 = vpack.c.bf16 %v2305_v22, %v2304_v4 }
 0xa19   : > { %v2240_v54 = vpop.permute.xlu1 %2239 }
 0xa1a   : > { %v2281_v12 = vadd.f32 %v2240_v54, %v2185_v26  ;;  %v2242_v40 = vpop.permute.xlu2 %2241 }
 0xa1b   : > { %v2282_v30 = vadd.f32 %v2242_v40, %v2186_v56  ;;  %v2182_v56 = vmax.f32 %v2107_v55, 0.0 }
 0xa1c   : > { %v2298_v34 = vadd.f32 %v3844_v23, %v2281_v12 }
 0xa1d   : > { %v2299_v45 = vadd.f32 %v3844_v23, %v2282_v30 }
 0xa1f   : > { %v2313_v20 = vpack.c.bf16 %v2299_v45, %v2298_v34  ;;  %v2912_v34 = vld [vmem:[%s3945_s3 + $0xac] sm:$0xff]  ;;  %v2910_v45 = vld [vmem:[%s3945_s3 + $0x9c] sm:$0xff] }
 0xa21   : > { %v2238_v11 = vpop.permute.xlu1 %2237 }
 0xa22   : > { %v2232_v41 = vpop.permute.xlu2 %2231  ;;  %v2280_v43 = vadd.f32 %v2238_v11, %v2184_v29 }
 0xa24   : > { %v2297_v4 = vadd.f32 %v3844_v23, %v2280_v43 }
 0xa29   : > { %v2228_v59 = vpop.permute.xlu1 %2227  ;;  %v2258_v44 = vpop.permute.xlu0 %2257 }
 0xa2a   : > { %v2275_v15 = vadd.f32 %v2228_v59, %v2179_v7  ;;  %v2290_v61 = vadd.f32 %v2258_v44, %v2194_v32  ;;  %v2230_v48 = vpop.permute.xlu2 %2229  ;;  %v2384_v32 = vperm.slane %v3841_v52, 2 }
 0xa2b   : > { %v2276_v33 = vadd.f32 %v2230_v48, %v2180_v27 }
 0xa2c   : > { %v2292_v35 = vadd.f32 %v3844_v23, %v2275_v15  ;;  %v2307_v49 = vadd.f32 %v3844_v23, %v2290_v61 }
 0xa2d   : > { %v2293_v25 = vadd.f32 %v3844_v23, %v2276_v33 }
 0xa2e   : > { %v2317_v47 = vpack.c.bf16 %v2307_v49, %v2306_v2 }
 0xa2f   : > { %v2310_v62 = vpack.c.bf16 %v2293_v25, %v2292_v35 }
 0xa30   : > { %2324 = vmatpush.bf16.msrb.mxu2 %v2317_v47 }
 0xa31   : > { %v2246_v6 = vpop.permute.xlu0 %2245 }
 0xa32   : > { %v2284_v9 = vadd.f32 %v2246_v6, %v2188_v28 }
 0xa34   : > { %v2301_v36 = vadd.f32 %v3844_v23, %v2284_v9  ;;  %2325 = vmatpush.bf16.msrb.mxu2 %v2316_v31  ;;  %v2181_v31 = vmax.f32 %v2105_v58, 0.0 }
 0xa36   : > { %v2314_v13 = vpack.c.bf16 %v2301_v36, %v2300_v19  ;;  %v2277_v54 = vadd.f32 %v2232_v41, %v2181_v31 }
 0xa38   : > { %2326 = vmatpush.bf16.msrb.mxu2 %v2315_v46  ;;  %v2294_v46 = vadd.f32 %v3844_v23, %v2277_v54 }
 0xa39   : > { %v2236_v57 = vpop.permute.xlu0 %2235 }
 0xa3a   : > { %v2279_v22 = vadd.f32 %v2236_v57, %v2183_v3 }
 0xa3c   : > { %v2296_v50 = vadd.f32 %v3844_v23, %v2279_v22  ;;  %2327 = vmatpush.bf16.msrb.mxu2 %v2314_v13 }
 0xa3e   : > { %v2312_v26 = vpack.c.bf16 %v2297_v4, %v2296_v50 }
 0xa40   : > { %2328 = vmatpush.bf16.msrb.mxu2 %v2313_v20  ;;  %v2909_v20 = vld [vmem:[%s3945_s3 + $0x94] sm:$0xff] }
 0xa41   : > { %v2234_v5 = vpop.permute.xlu0 %2233 }
 0xa42   : > { %v2278_v10 = vadd.f32 %v2234_v5, %v2182_v56 }
 0xa44   : > { %v2295_v63 = vadd.f32 %v3844_v23, %v2278_v10  ;;  %2329 = vmatpush.bf16.msrb.mxu2 %v2312_v26  ;;  %v2911_v23 = vld [vmem:[%s3945_s3 + $0xa4] sm:$0xff] }
 0xa46   : > { %v2311_v12 = vpack.c.bf16 %v2295_v63, %v2294_v46 }
 0xa48   : > { %2330 = vmatpush.bf16.msrb.mxu2 %v2311_v12 }
 0xa4c   : > { %2331 = vmatpush.bf16.msrb.mxu2 %v2310_v62 }
 0xa4f   : > { %2332 = vmatmul.bf16.vlgmr.msrb.gmra.mxu2 %v2906_v51 }
 0xa50   : > { %2416 = vmatpush.bf16.msra.mxu2 %v2912_v34 }
 0xa54   : > { %2417 = vmatpush.bf16.msra.mxu2 %v2911_v23 }
 0xa58   : > { %2418 = vmatpush.bf16.msra.mxu2 %v2910_v45 }
 0xa5c   : > { %2419 = vmatpush.bf16.msra.mxu2 %v2909_v20 }
 0xad2   : > { %v2333_v8 = vpop.f32.mrf.mxu2 }
 0xada   : > { %v2335_v40 = vpop.f32.mrf.mxu2 }
 0xadb   : > { %v2338_v30 = vpack.c.bf16 %v2335_v40, %v2333_v8 }
 0xadd   : > { %2840 = vmatmul.msk.bf16.vlgmr.msrb.gmra.mxu0 %vm1209_vm3, %v2338_v30 }
 0xb5a   : > { %v2368_v11 = vpop.f32.mrf.mxu0 }
 0xb5b   : > { %v2369_v41 = vadd.f32 %v2368_v11, %v2343_v1 }
 0xb5d   : > { %v2373_v14 = vmax.f32 %v2369_v41, 0.0 }
 0xb62   : > { %v2370_v53 = vpop.f32.mrf.mxu0 }
 0xb63   : > { %v2371_v39 = vadd.f32 %v2370_v53, %v2343_v1 }
 0xb65   : > { %v2374_v42 = vmax.f32 %v2371_v39, 0.0 }
 0xb67   : > { %v2375_v7 = vpack.c.bf16 %v2374_v42, %v2373_v14 }
 0xb69   : > { %2857 = vmatmul.msk.bf16.vlgmr.msra.gmra.mxu2 %vm812_vm2, %v2375_v7 }
 0xbec   : > { %v2421_v18 = vpop.f32.mrf.mxu2 }
 0xbed   : > { %v2422_v27 = vadd.f32 %v2421_v18, %v2384_v32 }
 0xbef   : > { %v2858_v59 = vmul.f32 -1.442695, %v2422_v27 }
 0xbf1   : > { %2958 = vpow2.f32 %v2858_v59 }
 0xbf4   : > { %v2423_v44 = vpop.f32.mrf.mxu2 }
 0xbf5   : > { %v2424_v17 = vadd.f32 %v2423_v44, %v2384_v32 }
 0xbf7   : > { %v2959_v15 = vpop.eup %2958  ;;  %v2859_v61 = vmul.f32 -1.442695, %v2424_v17 }
 0xbf8   : > { %v2432_v48 = vadd.f32 1.0, %v2959_v15 }
 0xbf9   : > { %2960 = vpow2.f32 %v2859_v61 }
 0xbfa   : > { %2962 = vrcp.f32 %v2432_v48  ;;  %v2445_v24 = vand.u32 2147483648, %v2432_v48  ;;  %v2443_v25 = vand.u32 2147483647, %v2432_v48  ;;  %vm2439_vm5 = vweird.f32 %v2432_v48 }
 0xbfc   : > { %v2446_v62 = vor.u32 1.1754944e-38, %v2445_v24  ;;  %vm2444_vm8 = vcmp.eq.f32.partialorder %v2443_v25, 8.507059e+37 }
 0xbff   : > { %v2961_v33 = vpop.eup %2960 }
 0xc00   : > { %v2963_v0 = vpop.eup %2962  ;;  %v2433_v2 = vadd.f32 1.0, %v2961_v33 }
 0xc01   : > { %v2435_v35 = vmul.f32 %v2963_v0, %v2432_v48  ;;  %vm2440_vm4 = vweird.f32 %v2963_v0 }
 0xc02   : > { %2964 = vrcp.f32 %v2433_v2  ;;  %vm2441_vm6 = vmor %vm2439_vm5, %vm2440_vm4  ;;  %v2460_v60 = vand.u32 2147483648, %v2433_v2  ;;  %v2458_v38 = vand.u32 2147483647, %v2433_v2  ;;  %vm2454_vm10 = vweird.f32 %v2433_v2 }
 0xc03   : > { %v2436_v49 = vsub.f32 1.0, %v2435_v35 }
 0xc04   : > { %v2461_v36 = vor.u32 1.1754944e-38, %v2460_v60  ;;  %vm2459_vm12 = vcmp.eq.f32.partialorder %v2458_v38, 8.507059e+37 }
 0xc05   : > { %v2437_v52 = vmul.f32 %v2963_v0, %v2436_v49 }
 0xc07   : > { %v2438_v37 = vadd.f32 %v2963_v0, %v2437_v52 }
 0xc08   : > { %v2965_v47 = vpop.eup %2964 }
 0xc09   : > { %v2442_v16 = vsel %vm2441_vm6, %v2963_v0, %v2438_v37  ;;  %v2450_v28 = vmul.f32 %v2965_v47, %v2433_v2  ;;  %vm2455_vm9 = vweird.f32 %v2965_v47 }
 0xc0a   : > { %v2447_v21 = vsel %vm2444_vm8, %v2446_v62, %v2442_v16  ;;  %vm2456_vm11 = vmor %vm2454_vm10, %vm2455_vm9 }
 0xc0b   : > { %2465 = vst.msk [vmem:[%s286_s24] sm:$0xff] %vm2464_vm7, %v2447_v21  ;;  %v2451_v6 = vsub.f32 1.0, %v2450_v28 }
 0xc0d   : > { %v2452_v9 = vmul.f32 %v2965_v47, %v2451_v6 }
 0xc0f   : > { %v2453_v19 = vadd.f32 %v2965_v47, %v2452_v9 }
 0xc11   : > { %v2457_v29 = vsel %vm2456_vm11, %v2965_v47, %v2453_v19 }
 0xc12   : > { %v2462_v13 = vsel %vm2459_vm12, %v2461_v36, %v2457_v29 }
 0xc13   : > { %2466 = vst.msk [vmem:[%s286_s24 + $0x8] sm:$0xff] %vm2464_vm7, %v2462_v13 }
 0xc14 PF: > { %p15_p7 = scmp.ge.s32.totalorder %s3104_s23, 6   ;;  %s3951_s18 = smov %s3039_s19 }
 0xc15   : > { %s3952_s19 = smov %s3043_s20  ;;  %s3953_s20 = smov %s3114_s26 }
 0xc16   : > { %s3954_s21 = smov %s3104_s23  ;;  %17 = sbr.rel (!%p15_p7) target bundleno = 3 (0x3), region = 86 }
 0xc1b   :  { %2488 = vsyncpa [#allocation3], 1 }
 0xc1c   :  { %2490 = vsyncpa [#allocation3 + $0x1], 1 }

</bundles_post_ra>
